<compile_context>
chip_gen: v7x
topology: tpu7x:2x2x1
jax: 0.10.0
libtpu: 0.0.40
codegen_flags: <defaults>
</compile_context>

<pallas_src>
import functools

import numpy as np
import jax
import jax.numpy as jnp
from jax import lax
from jax.experimental import pallas as pl
from jax.experimental.pallas import tpu as pltpu

ELU_ALPHA = 1.0
LEAKY_SLOPE = 0.01

N_NODES = 10
NUM_FEATURES = 20
HIDDENS = (2 * 5, 3 * 5, 2 * 5, 3 * 5, 2 * 5)        # 10, 15, 10, 15, 10
IN_DIMS = (NUM_FEATURES,) + HIDDENS[:-1]             # 20, 10, 15, 10, 15
OUT_DIMS = HIDDENS

_PACK_WIDTH = sum(HIDDENS) + N_NODES                 # 60 + 10 = 70
OUT_WIDTH = int(np.ceil(_PACK_WIDTH / 128) * 128)    # lane-dense 128

W_PAD_IN = 32        # sublane-aligned slab rows  (>= max in-dim 20, multiple of 8)
W_PAD_OUT = 128      # lane-aligned slab columns  (>= max out-dim 15)


def _sigmoid(v):
    # tanh-based sigmoid: a single EUP op, exact, no exp(-v) -> inf edge case.
    return 0.5 * jnp.tanh(0.5 * v) + 0.5


def _gcn_kernel(edges_ref, x_ref, w_ref, out_ref, *, e_max):
    f32 = jnp.float32
    n = x_ref.shape[0]
    b = pl.program_id(0)

    # ---- dense 0/1 adjacency built in-kernel from SMEM-prefetched edge list ----
    row = lax.broadcasted_iota(jnp.int32, (n, n), 0)
    col = lax.broadcasted_iota(jnp.int32, (n, n), 1)

    def add_edge(e, a):
        src = edges_ref[b, e]              # -1 padding never matches an iota value
        dst = edges_ref[b, e_max + e]
        hit = jnp.logical_and(jnp.logical_and(row == src, col == dst), src >= 0)
        return jnp.maximum(a, hit.astype(f32))   # max-accumulate == dedup (A is 0/1)

    a = lax.fori_loop(0, e_max, add_edge, jnp.zeros((n, n), f32), unroll=True)

    # ---- A_norm = D^{-1/2} (A + I) D^{-1/2},  D = diag(colsum(A) + 1) ----
    # Edge list is symmetrized (ToUndirected), so rowsum == colsum: two plain
    # reduces + two rsqrts, no [n,n] multiply feeding an XLU reduce.
    eye = (row == col).astype(f32)
    a_hat = a + eye
    d_inv_c = lax.rsqrt(jnp.sum(a, axis=0, keepdims=True) + 1.0)   # [1, n]
    d_inv_r = lax.rsqrt(jnp.sum(a, axis=1, keepdims=True) + 1.0)   # [n, 1]
    a_norm = d_inv_r * a_hat * d_inv_c

    def layer(h, s):
        # static, aligned view into the packed weight slab (zero-cost slice)
        w = w_ref[s, 0:IN_DIMS[s], 0:OUT_DIMS[s]]
        hw = jnp.dot(h, w, preferred_element_type=f32)
        return jnp.dot(a_norm, hw, preferred_element_type=f32)     # A_norm @ (h @ W)

    x = x_ref[...]
    p1 = layer(x, 0)
    h1 = jnp.where(p1 >= 0, p1, LEAKY_SLOPE * p1)                                   # LeakyReLU
    p2 = layer(h1, 1)
    h2 = jnp.where(p2 > 0, p2, ELU_ALPHA * (jnp.exp(jnp.minimum(p2, 0.0)) - 1.0))   # ELU
    p3 = layer(h2, 2)
    h3 = p3 * _sigmoid(p3)                                                          # SiLU
    p4 = layer(h3, 3)
    h4 = jnp.maximum(p4, 0.0)                                                       # ReLU
    h5 = layer(h4, 4)                                                               # linear

    # decoder: z = sigmoid(h5 @ h5^T) — contract lane dims of both operands (no .T)
    h6 = lax.dot_general(h5, h5, dimension_numbers=(((1,), (1,)), ((), ())),
                         preferred_element_type=f32)
    z = _sigmoid(h6)

    # ---- one lane-dense output slab [h1|h2|h3|h4|h5|z|0-pad], single unmasked store ----
    parts = [h1, h2, h3, h4, h5, z]
    pad = out_ref.shape[1] - (sum(OUT_DIMS) + n)
    if pad > 0:
        parts.append(jnp.zeros((n, pad), f32))
    out_ref[...] = jnp.concatenate(parts, axis=1)


def _pack_weights(W_kron):
    """W_kron[s]: (out_s, in_s); forward uses W[s] = W_kron[s].T.  Pack all five
    transposed, zero-padded weights into one (8,128)-tile-aligned slab -> one DMA."""
    slab = np.zeros((len(W_kron), W_PAD_IN, W_PAD_OUT), np.float32)
    for s, w in enumerate(W_kron):
        wt = np.asarray(w, np.float32).T                    # [in_s, out_s]
        slab[s, : wt.shape[0], : wt.shape[1]] = wt
    return jnp.asarray(slab)


def gcn_kron_forward(x, edge_index, W_kron):
    """Batched GCN_Kron forward.

    x:          [B, n, num_features] float
    edge_index: [B, 2, E_max] int32, padded with -1; must already contain both
                directions of every undirected edge (as the spec's ToUndirected does)
    W_kron:     list of 5 arrays, W_kron[s] of shape (out_s, in_s)
    Returns (h, z): h = [h0..h5] with h_i of shape [B, n, dim_i]; z of shape [B, n, n].
    """
    x_f32 = jnp.asarray(x, jnp.float32)
    B, n, F = x_f32.shape
    e_max = edge_index.shape[2]
    edges_flat = jnp.asarray(edge_index, jnp.int32).reshape(B, 2 * e_max)
    w_slab = _pack_weights(W_kron)

    out = pl.pallas_call(
        functools.partial(_gcn_kernel, e_max=e_max),
        out_shape=jax.ShapeDtypeStruct((B, n, OUT_WIDTH), jnp.float32),
        grid_spec=pltpu.PrefetchScalarGridSpec(
            num_scalar_prefetch=1,                  # edge lists land in SMEM
            grid=(B,),                              # one graph per grid step
            in_specs=[
                pl.BlockSpec((None, n, F), lambda b, ed: (b, 0, 0)),            # x[b]
                pl.BlockSpec((len(W_kron), W_PAD_IN, W_PAD_OUT),
                             lambda b, ed: (0, 0, 0)),                          # weights, resident
            ],
            out_specs=pl.BlockSpec((None, n, OUT_WIDTH), lambda b, ed: (b, 0, 0)),
        ),
        compiler_params=pltpu.CompilerParams(
            dimension_semantics=("parallel",)),     # batch axis -> megacore sharding
    )(edges_flat, x_f32, w_slab)

    offs = np.cumsum([0] + list(HIDDENS)).tolist()          # [0, 10, 25, 35, 50, 60]
    h = [x_f32] + [out[:, :, offs[s]:offs[s + 1]] for s in range(5)]
    z = out[:, :, offs[5]:offs[5] + n]
    return h, z


def _reference_forward_np(x, edge_index, W_kron):
    """Pure-NumPy float64 reference mirroring the PyTorch module (single graph)."""
    x = np.asarray(x, np.float64)
    n = x.shape[0]
    A = np.zeros((n, n), np.float64)
    A[np.asarray(edge_index[0]), np.asarray(edge_index[1])] = 1.0
    d_inv = 1.0 / np.sqrt(A.sum(axis=0) + 1.0)
    A_norm = d_inv[:, None] * (A + np.eye(n)) * d_inv[None, :]
    W = [np.asarray(w, np.float64).T for w in W_kron]
    sig = lambda v: 1.0 / (1.0 + np.exp(-v))
    h0 = x
    t1 = (A_norm @ h0) @ W[0]; h1 = np.where(t1 >= 0, t1, LEAKY_SLOPE * t1)
    t2 = (A_norm @ h1) @ W[1]; h2 = np.where(t2 > 0, t2,
                                             ELU_ALPHA * (np.exp(np.minimum(t2, 0.0)) - 1.0))
    t3 = (A_norm @ h2) @ W[2]; h3 = t3 * sig(t3)
    t4 = (A_norm @ h3) @ W[3]; h4 = np.maximum(t4, 0.0)
    h5 = (A_norm @ h4) @ W[4]
    z = sig(h5 @ h5.T)
    return [h0, h1, h2, h3, h4, h5], z


if __name__ == "__main__":
    key = jax.random.PRNGKey(0)
    k_x, k0, k1, k2, k3, k4 = jax.random.split(key, 6)
    keys = [k0, k1, k2, k3, k4]

    B, n = 8, N_NODES
    x = jax.random.normal(k_x, (B, n, NUM_FEATURES), dtype=jnp.float32)

    # W_kron[s] has shape (out_s, in_s); forward uses its transpose (shared across graphs)
    dims = [NUM_FEATURES] + list(HIDDENS)
    W_kron = [0.1 * jax.random.normal(keys[s], (dims[s + 1], dims[s]), dtype=jnp.float32)
              for s in range(5)]

    # B deterministic undirected graphs: ring over 10 nodes + per-graph chord 0-(2+b%7)
    edge_lists = []
    for b in range(B):
        src = list(range(n)) + [0]
        dst = [(i + 1) % n for i in range(n)] + [2 + (b % 7)]
        ei = np.array([src + dst, dst + src], dtype=np.int32)   # both directions
        edge_lists.append(ei)
    e_max = max(e.shape[1] for e in edge_lists)
    edge_index_np = np.full((B, 2, e_max), -1, np.int32)        # -1 = padding
    for b, e in enumerate(edge_lists):
        edge_index_np[b, :, :e.shape[1]] = e
    edge_index = jnp.asarray(edge_index_np)

    h, z = gcn_kron_forward(x, edge_index, W_kron)
    jax.block_until_ready(z)
    for hi in h:
        jax.block_until_ready(hi)

    assert z.shape == (B, n, n)
    assert h[5].shape == (B, n, HIDDENS[4])
    assert bool(jnp.all(jnp.isfinite(z)))

    # sanity-check against a float64 NumPy reference (loose tol covers MXU f32 passes)
    x_np = np.asarray(x)
    z_np = np.asarray(z)
    h_np = [np.asarray(hi) for hi in h]
    max_err = 0.0
    for b in range(B):
        h_ref, z_ref = _reference_forward_np(x_np[b], edge_lists[b], W_kron)
        max_err = max(max_err, float(np.max(np.abs(z_np[b] - z_ref))))
        for s in range(6):
            max_err = max(max_err, float(np.max(np.abs(h_np[s][b] - h_ref[s]))))
    assert max_err < 5e-2, f"mismatch vs reference: max abs err = {max_err}"

    print("KERNEL_OK")
</pallas_src>

<mosaic_0001>
module attributes {stable_mosaic.version = 11 : i64} {
  func.func @_gcn_kernel(%arg0: i32, %arg1: memref<8x44xi32, #tpu.memory_space<smem>>, %arg2: memref<1x10x20xf32, #tpu.memory_space<vmem>>, %arg3: memref<5x32x128xf32, #tpu.memory_space<vmem>>, %arg4: memref<1x10x128xf32, #tpu.memory_space<vmem>>) attributes {dimension_semantics = [#tpu.dimension_semantics<parallel>], iteration_bounds = array<i64: 8>, scalar_prefetch = 1 : i64, scratch_operands = 0 : i64, tpu.core_type = #tpu.core_type<tc>, window_params = [{transform_indices = @transform_0, window_bounds = array<i64: 1, 10, 20>}, {pipeline_mode = #tpu.pipeline_mode<synchronous>, transform_indices = @transform_1, window_bounds = array<i64: 5, 32, 128>}, {transform_indices = @transform_2, window_bounds = array<i64: 1, 10, 128>}]} {
    %0 = tpu.iota {dimensions = array<i32: 0>} : vector<10x10xi32>
    %1 = tpu.iota {dimensions = array<i32: 1>} : vector<10x10xi32>
    %cst = arith.constant 0.000000e+00 : f32
    %2 = vector.broadcast %cst : f32 to vector<10x10xf32>
    %c0_i32 = arith.constant 0 : i32
    %3 = arith.index_cast %arg0 : i32 to index
    %4 = arith.index_cast %c0_i32 : i32 to index
    %5 = memref.load %arg1[%3, %4] : memref<8x44xi32, #tpu.memory_space<smem>>
    %c22_i32 = arith.constant 22 : i32
    %6 = arith.addi %c22_i32, %c0_i32 : i32
    %7 = arith.index_cast %arg0 : i32 to index
    %8 = arith.index_cast %6 : i32 to index
    %9 = memref.load %arg1[%7, %8] : memref<8x44xi32, #tpu.memory_space<smem>>
    %10 = vector.broadcast %5 : i32 to vector<10x10xi32>
    %11 = arith.cmpi eq, %0, %10 : vector<10x10xi32>
    %12 = vector.broadcast %9 : i32 to vector<10x10xi32>
    %13 = arith.cmpi eq, %1, %12 : vector<10x10xi32>
    %14 = arith.andi %11, %13 : vector<10x10xi1>
    %c0_i32_0 = arith.constant 0 : i32
    %15 = arith.cmpi sge, %5, %c0_i32_0 : i32
    %16 = vector.broadcast %15 : i1 to vector<10x10xi1>
    %17 = arith.andi %14, %16 : vector<10x10xi1>
    %18 = arith.extui %17 : vector<10x10xi1> to vector<10x10xi32>
    %19 = arith.sitofp %18 : vector<10x10xi32> to vector<10x10xf32>
    %20 = arith.maximumf %2, %19 : vector<10x10xf32>
    %c1_i32 = arith.constant 1 : i32
    %21 = arith.index_cast %arg0 : i32 to index
    %22 = arith.index_cast %c1_i32 : i32 to index
    %23 = memref.load %arg1[%21, %22] : memref<8x44xi32, #tpu.memory_space<smem>>
    %c22_i32_1 = arith.constant 22 : i32
    %24 = arith.addi %c22_i32_1, %c1_i32 : i32
    %25 = arith.index_cast %arg0 : i32 to index
    %26 = arith.index_cast %24 : i32 to index
    %27 = memref.load %arg1[%25, %26] : memref<8x44xi32, #tpu.memory_space<smem>>
    %28 = vector.broadcast %23 : i32 to vector<10x10xi32>
    %29 = arith.cmpi eq, %0, %28 : vector<10x10xi32>
    %30 = vector.broadcast %27 : i32 to vector<10x10xi32>
    %31 = arith.cmpi eq, %1, %30 : vector<10x10xi32>
    %32 = arith.andi %29, %31 : vector<10x10xi1>
    %c0_i32_2 = arith.constant 0 : i32
    %33 = arith.cmpi sge, %23, %c0_i32_2 : i32
    %34 = vector.broadcast %33 : i1 to vector<10x10xi1>
    %35 = arith.andi %32, %34 : vector<10x10xi1>
    %36 = arith.extui %35 : vector<10x10xi1> to vector<10x10xi32>
    %37 = arith.sitofp %36 : vector<10x10xi32> to vector<10x10xf32>
    %38 = arith.maximumf %20, %37 : vector<10x10xf32>
    %c2_i32 = arith.constant 2 : i32
    %39 = arith.index_cast %arg0 : i32 to index
    %40 = arith.index_cast %c2_i32 : i32 to index
    %41 = memref.load %arg1[%39, %40] : memref<8x44xi32, #tpu.memory_space<smem>>
    %c22_i32_3 = arith.constant 22 : i32
    %42 = arith.addi %c22_i32_3, %c2_i32 : i32
    %43 = arith.index_cast %arg0 : i32 to index
    %44 = arith.index_cast %42 : i32 to index
    %45 = memref.load %arg1[%43, %44] : memref<8x44xi32, #tpu.memory_space<smem>>
    %46 = vector.broadcast %41 : i32 to vector<10x10xi32>
    %47 = arith.cmpi eq, %0, %46 : vector<10x10xi32>
    %48 = vector.broadcast %45 : i32 to vector<10x10xi32>
    %49 = arith.cmpi eq, %1, %48 : vector<10x10xi32>
    %50 = arith.andi %47, %49 : vector<10x10xi1>
    %c0_i32_4 = arith.constant 0 : i32
    %51 = arith.cmpi sge, %41, %c0_i32_4 : i32
    %52 = vector.broadcast %51 : i1 to vector<10x10xi1>
    %53 = arith.andi %50, %52 : vector<10x10xi1>
    %54 = arith.extui %53 : vector<10x10xi1> to vector<10x10xi32>
    %55 = arith.sitofp %54 : vector<10x10xi32> to vector<10x10xf32>
    %56 = arith.maximumf %38, %55 : vector<10x10xf32>
    %c3_i32 = arith.constant 3 : i32
    %57 = arith.index_cast %arg0 : i32 to index
    %58 = arith.index_cast %c3_i32 : i32 to index
    %59 = memref.load %arg1[%57, %58] : memref<8x44xi32, #tpu.memory_space<smem>>
    %c22_i32_5 = arith.constant 22 : i32
    %60 = arith.addi %c22_i32_5, %c3_i32 : i32
    %61 = arith.index_cast %arg0 : i32 to index
    %62 = arith.index_cast %60 : i32 to index
    %63 = memref.load %arg1[%61, %62] : memref<8x44xi32, #tpu.memory_space<smem>>
    %64 = vector.broadcast %59 : i32 to vector<10x10xi32>
    %65 = arith.cmpi eq, %0, %64 : vector<10x10xi32>
    %66 = vector.broadcast %63 : i32 to vector<10x10xi32>
    %67 = arith.cmpi eq, %1, %66 : vector<10x10xi32>
    %68 = arith.andi %65, %67 : vector<10x10xi1>
    %c0_i32_6 = arith.constant 0 : i32
    %69 = arith.cmpi sge, %59, %c0_i32_6 : i32
    %70 = vector.broadcast %69 : i1 to vector<10x10xi1>
    %71 = arith.andi %68, %70 : vector<10x10xi1>
    %72 = arith.extui %71 : vector<10x10xi1> to vector<10x10xi32>
    %73 = arith.sitofp %72 : vector<10x10xi32> to vector<10x10xf32>
    %74 = arith.maximumf %56, %73 : vector<10x10xf32>
    %c4_i32 = arith.constant 4 : i32
    %75 = arith.index_cast %arg0 : i32 to index
    %76 = arith.index_cast %c4_i32 : i32 to index
    %77 = memref.load %arg1[%75, %76] : memref<8x44xi32, #tpu.memory_space<smem>>
    %c22_i32_7 = arith.constant 22 : i32
    %78 = arith.addi %c22_i32_7, %c4_i32 : i32
    %79 = arith.index_cast %arg0 : i32 to index
    %80 = arith.index_cast %78 : i32 to index
    %81 = memref.load %arg1[%79, %80] : memref<8x44xi32, #tpu.memory_space<smem>>
    %82 = vector.broadcast %77 : i32 to vector<10x10xi32>
    %83 = arith.cmpi eq, %0, %82 : vector<10x10xi32>
    %84 = vector.broadcast %81 : i32 to vector<10x10xi32>
    %85 = arith.cmpi eq, %1, %84 : vector<10x10xi32>
    %86 = arith.andi %83, %85 : vector<10x10xi1>
    %c0_i32_8 = arith.constant 0 : i32
    %87 = arith.cmpi sge, %77, %c0_i32_8 : i32
    %88 = vector.broadcast %87 : i1 to vector<10x10xi1>
    %89 = arith.andi %86, %88 : vector<10x10xi1>
    %90 = arith.extui %89 : vector<10x10xi1> to vector<10x10xi32>
    %91 = arith.sitofp %90 : vector<10x10xi32> to vector<10x10xf32>
    %92 = arith.maximumf %74, %91 : vector<10x10xf32>
    %c5_i32 = arith.constant 5 : i32
    %93 = arith.index_cast %arg0 : i32 to index
    %94 = arith.index_cast %c5_i32 : i32 to index
    %95 = memref.load %arg1[%93, %94] : memref<8x44xi32, #tpu.memory_space<smem>>
    %c22_i32_9 = arith.constant 22 : i32
    %96 = arith.addi %c22_i32_9, %c5_i32 : i32
    %97 = arith.index_cast %arg0 : i32 to index
    %98 = arith.index_cast %96 : i32 to index
    %99 = memref.load %arg1[%97, %98] : memref<8x44xi32, #tpu.memory_space<smem>>
    %100 = vector.broadcast %95 : i32 to vector<10x10xi32>
    %101 = arith.cmpi eq, %0, %100 : vector<10x10xi32>
    %102 = vector.broadcast %99 : i32 to vector<10x10xi32>
    %103 = arith.cmpi eq, %1, %102 : vector<10x10xi32>
    %104 = arith.andi %101, %103 : vector<10x10xi1>
    %c0_i32_10 = arith.constant 0 : i32
    %105 = arith.cmpi sge, %95, %c0_i32_10 : i32
    %106 = vector.broadcast %105 : i1 to vector<10x10xi1>
    %107 = arith.andi %104, %106 : vector<10x10xi1>
    %108 = arith.extui %107 : vector<10x10xi1> to vector<10x10xi32>
    %109 = arith.sitofp %108 : vector<10x10xi32> to vector<10x10xf32>
    %110 = arith.maximumf %92, %109 : vector<10x10xf32>
    %c6_i32 = arith.constant 6 : i32
    %111 = arith.index_cast %arg0 : i32 to index
    %112 = arith.index_cast %c6_i32 : i32 to index
    %113 = memref.load %arg1[%111, %112] : memref<8x44xi32, #tpu.memory_space<smem>>
    %c22_i32_11 = arith.constant 22 : i32
    %114 = arith.addi %c22_i32_11, %c6_i32 : i32
    %115 = arith.index_cast %arg0 : i32 to index
    %116 = arith.index_cast %114 : i32 to index
    %117 = memref.load %arg1[%115, %116] : memref<8x44xi32, #tpu.memory_space<smem>>
    %118 = vector.broadcast %113 : i32 to vector<10x10xi32>
    %119 = arith.cmpi eq, %0, %118 : vector<10x10xi32>
    %120 = vector.broadcast %117 : i32 to vector<10x10xi32>
    %121 = arith.cmpi eq, %1, %120 : vector<10x10xi32>
    %122 = arith.andi %119, %121 : vector<10x10xi1>
    %c0_i32_12 = arith.constant 0 : i32
    %123 = arith.cmpi sge, %113, %c0_i32_12 : i32
    %124 = vector.broadcast %123 : i1 to vector<10x10xi1>
    %125 = arith.andi %122, %124 : vector<10x10xi1>
    %126 = arith.extui %125 : vector<10x10xi1> to vector<10x10xi32>
    %127 = arith.sitofp %126 : vector<10x10xi32> to vector<10x10xf32>
    %128 = arith.maximumf %110, %127 : vector<10x10xf32>
    %c7_i32 = arith.constant 7 : i32
    %129 = arith.index_cast %arg0 : i32 to index
    %130 = arith.index_cast %c7_i32 : i32 to index
    %131 = memref.load %arg1[%129, %130] : memref<8x44xi32, #tpu.memory_space<smem>>
    %c22_i32_13 = arith.constant 22 : i32
    %132 = arith.addi %c22_i32_13, %c7_i32 : i32
    %133 = arith.index_cast %arg0 : i32 to index
    %134 = arith.index_cast %132 : i32 to index
    %135 = memref.load %arg1[%133, %134] : memref<8x44xi32, #tpu.memory_space<smem>>
    %136 = vector.broadcast %131 : i32 to vector<10x10xi32>
    %137 = arith.cmpi eq, %0, %136 : vector<10x10xi32>
    %138 = vector.broadcast %135 : i32 to vector<10x10xi32>
    %139 = arith.cmpi eq, %1, %138 : vector<10x10xi32>
    %140 = arith.andi %137, %139 : vector<10x10xi1>
    %c0_i32_14 = arith.constant 0 : i32
    %141 = arith.cmpi sge, %131, %c0_i32_14 : i32
    %142 = vector.broadcast %141 : i1 to vector<10x10xi1>
    %143 = arith.andi %140, %142 : vector<10x10xi1>
    %144 = arith.extui %143 : vector<10x10xi1> to vector<10x10xi32>
    %145 = arith.sitofp %144 : vector<10x10xi32> to vector<10x10xf32>
    %146 = arith.maximumf %128, %145 : vector<10x10xf32>
    %c8_i32 = arith.constant 8 : i32
    %147 = arith.index_cast %arg0 : i32 to index
    %148 = arith.index_cast %c8_i32 : i32 to index
    %149 = memref.load %arg1[%147, %148] : memref<8x44xi32, #tpu.memory_space<smem>>
    %c22_i32_15 = arith.constant 22 : i32
    %150 = arith.addi %c22_i32_15, %c8_i32 : i32
    %151 = arith.index_cast %arg0 : i32 to index
    %152 = arith.index_cast %150 : i32 to index
    %153 = memref.load %arg1[%151, %152] : memref<8x44xi32, #tpu.memory_space<smem>>
    %154 = vector.broadcast %149 : i32 to vector<10x10xi32>
    %155 = arith.cmpi eq, %0, %154 : vector<10x10xi32>
    %156 = vector.broadcast %153 : i32 to vector<10x10xi32>
    %157 = arith.cmpi eq, %1, %156 : vector<10x10xi32>
    %158 = arith.andi %155, %157 : vector<10x10xi1>
    %c0_i32_16 = arith.constant 0 : i32
    %159 = arith.cmpi sge, %149, %c0_i32_16 : i32
    %160 = vector.broadcast %159 : i1 to vector<10x10xi1>
    %161 = arith.andi %158, %160 : vector<10x10xi1>
    %162 = arith.extui %161 : vector<10x10xi1> to vector<10x10xi32>
    %163 = arith.sitofp %162 : vector<10x10xi32> to vector<10x10xf32>
    %164 = arith.maximumf %146, %163 : vector<10x10xf32>
    %c9_i32 = arith.constant 9 : i32
    %165 = arith.index_cast %arg0 : i32 to index
    %166 = arith.index_cast %c9_i32 : i32 to index
    %167 = memref.load %arg1[%165, %166] : memref<8x44xi32, #tpu.memory_space<smem>>
    %c22_i32_17 = arith.constant 22 : i32
    %168 = arith.addi %c22_i32_17, %c9_i32 : i32
    %169 = arith.index_cast %arg0 : i32 to index
    %170 = arith.index_cast %168 : i32 to index
    %171 = memref.load %arg1[%169, %170] : memref<8x44xi32, #tpu.memory_space<smem>>
    %172 = vector.broadcast %167 : i32 to vector<10x10xi32>
    %173 = arith.cmpi eq, %0, %172 : vector<10x10xi32>
    %174 = vector.broadcast %171 : i32 to vector<10x10xi32>
    %175 = arith.cmpi eq, %1, %174 : vector<10x10xi32>
    %176 = arith.andi %173, %175 : vector<10x10xi1>
    %c0_i32_18 = arith.constant 0 : i32
    %177 = arith.cmpi sge, %167, %c0_i32_18 : i32
    %178 = vector.broadcast %177 : i1 to vector<10x10xi1>
    %179 = arith.andi %176, %178 : vector<10x10xi1>
    %180 = arith.extui %179 : vector<10x10xi1> to vector<10x10xi32>
    %181 = arith.sitofp %180 : vector<10x10xi32> to vector<10x10xf32>
    %182 = arith.maximumf %164, %181 : vector<10x10xf32>
    %c10_i32 = arith.constant 10 : i32
    %183 = arith.index_cast %arg0 : i32 to index
    %184 = arith.index_cast %c10_i32 : i32 to index
    %185 = memref.load %arg1[%183, %184] : memref<8x44xi32, #tpu.memory_space<smem>>
    %c22_i32_19 = arith.constant 22 : i32
    %186 = arith.addi %c22_i32_19, %c10_i32 : i32
    %187 = arith.index_cast %arg0 : i32 to index
    %188 = arith.index_cast %186 : i32 to index
    %189 = memref.load %arg1[%187, %188] : memref<8x44xi32, #tpu.memory_space<smem>>
    %190 = vector.broadcast %185 : i32 to vector<10x10xi32>
    %191 = arith.cmpi eq, %0, %190 : vector<10x10xi32>
    %192 = vector.broadcast %189 : i32 to vector<10x10xi32>
    %193 = arith.cmpi eq, %1, %192 : vector<10x10xi32>
    %194 = arith.andi %191, %193 : vector<10x10xi1>
    %c0_i32_20 = arith.constant 0 : i32
    %195 = arith.cmpi sge, %185, %c0_i32_20 : i32
    %196 = vector.broadcast %195 : i1 to vector<10x10xi1>
    %197 = arith.andi %194, %196 : vector<10x10xi1>
    %198 = arith.extui %197 : vector<10x10xi1> to vector<10x10xi32>
    %199 = arith.sitofp %198 : vector<10x10xi32> to vector<10x10xf32>
    %200 = arith.maximumf %182, %199 : vector<10x10xf32>
    %c11_i32 = arith.constant 11 : i32
    %201 = arith.index_cast %arg0 : i32 to index
    %202 = arith.index_cast %c11_i32 : i32 to index
    %203 = memref.load %arg1[%201, %202] : memref<8x44xi32, #tpu.memory_space<smem>>
    %c22_i32_21 = arith.constant 22 : i32
    %204 = arith.addi %c22_i32_21, %c11_i32 : i32
    %205 = arith.index_cast %arg0 : i32 to index
    %206 = arith.index_cast %204 : i32 to index
    %207 = memref.load %arg1[%205, %206] : memref<8x44xi32, #tpu.memory_space<smem>>
    %208 = vector.broadcast %203 : i32 to vector<10x10xi32>
    %209 = arith.cmpi eq, %0, %208 : vector<10x10xi32>
    %210 = vector.broadcast %207 : i32 to vector<10x10xi32>
    %211 = arith.cmpi eq, %1, %210 : vector<10x10xi32>
    %212 = arith.andi %209, %211 : vector<10x10xi1>
    %c0_i32_22 = arith.constant 0 : i32
    %213 = arith.cmpi sge, %203, %c0_i32_22 : i32
    %214 = vector.broadcast %213 : i1 to vector<10x10xi1>
    %215 = arith.andi %212, %214 : vector<10x10xi1>
    %216 = arith.extui %215 : vector<10x10xi1> to vector<10x10xi32>
    %217 = arith.sitofp %216 : vector<10x10xi32> to vector<10x10xf32>
    %218 = arith.maximumf %200, %217 : vector<10x10xf32>
    %c12_i32 = arith.constant 12 : i32
    %219 = arith.index_cast %arg0 : i32 to index
    %220 = arith.index_cast %c12_i32 : i32 to index
    %221 = memref.load %arg1[%219, %220] : memref<8x44xi32, #tpu.memory_space<smem>>
    %c22_i32_23 = arith.constant 22 : i32
    %222 = arith.addi %c22_i32_23, %c12_i32 : i32
    %223 = arith.index_cast %arg0 : i32 to index
    %224 = arith.index_cast %222 : i32 to index
    %225 = memref.load %arg1[%223, %224] : memref<8x44xi32, #tpu.memory_space<smem>>
    %226 = vector.broadcast %221 : i32 to vector<10x10xi32>
    %227 = arith.cmpi eq, %0, %226 : vector<10x10xi32>
    %228 = vector.broadcast %225 : i32 to vector<10x10xi32>
    %229 = arith.cmpi eq, %1, %228 : vector<10x10xi32>
    %230 = arith.andi %227, %229 : vector<10x10xi1>
    %c0_i32_24 = arith.constant 0 : i32
    %231 = arith.cmpi sge, %221, %c0_i32_24 : i32
    %232 = vector.broadcast %231 : i1 to vector<10x10xi1>
    %233 = arith.andi %230, %232 : vector<10x10xi1>
    %234 = arith.extui %233 : vector<10x10xi1> to vector<10x10xi32>
    %235 = arith.sitofp %234 : vector<10x10xi32> to vector<10x10xf32>
    %236 = arith.maximumf %218, %235 : vector<10x10xf32>
    %c13_i32 = arith.constant 13 : i32
    %237 = arith.index_cast %arg0 : i32 to index
    %238 = arith.index_cast %c13_i32 : i32 to index
    %239 = memref.load %arg1[%237, %238] : memref<8x44xi32, #tpu.memory_space<smem>>
    %c22_i32_25 = arith.constant 22 : i32
    %240 = arith.addi %c22_i32_25, %c13_i32 : i32
    %241 = arith.index_cast %arg0 : i32 to index
    %242 = arith.index_cast %240 : i32 to index
    %243 = memref.load %arg1[%241, %242] : memref<8x44xi32, #tpu.memory_space<smem>>
    %244 = vector.broadcast %239 : i32 to vector<10x10xi32>
    %245 = arith.cmpi eq, %0, %244 : vector<10x10xi32>
    %246 = vector.broadcast %243 : i32 to vector<10x10xi32>
    %247 = arith.cmpi eq, %1, %246 : vector<10x10xi32>
    %248 = arith.andi %245, %247 : vector<10x10xi1>
    %c0_i32_26 = arith.constant 0 : i32
    %249 = arith.cmpi sge, %239, %c0_i32_26 : i32
    %250 = vector.broadcast %249 : i1 to vector<10x10xi1>
    %251 = arith.andi %248, %250 : vector<10x10xi1>
    %252 = arith.extui %251 : vector<10x10xi1> to vector<10x10xi32>
    %253 = arith.sitofp %252 : vector<10x10xi32> to vector<10x10xf32>
    %254 = arith.maximumf %236, %253 : vector<10x10xf32>
    %c14_i32 = arith.constant 14 : i32
    %255 = arith.index_cast %arg0 : i32 to index
    %256 = arith.index_cast %c14_i32 : i32 to index
    %257 = memref.load %arg1[%255, %256] : memref<8x44xi32, #tpu.memory_space<smem>>
    %c22_i32_27 = arith.constant 22 : i32
    %258 = arith.addi %c22_i32_27, %c14_i32 : i32
    %259 = arith.index_cast %arg0 : i32 to index
    %260 = arith.index_cast %258 : i32 to index
    %261 = memref.load %arg1[%259, %260] : memref<8x44xi32, #tpu.memory_space<smem>>
    %262 = vector.broadcast %257 : i32 to vector<10x10xi32>
    %263 = arith.cmpi eq, %0, %262 : vector<10x10xi32>
    %264 = vector.broadcast %261 : i32 to vector<10x10xi32>
    %265 = arith.cmpi eq, %1, %264 : vector<10x10xi32>
    %266 = arith.andi %263, %265 : vector<10x10xi1>
    %c0_i32_28 = arith.constant 0 : i32
    %267 = arith.cmpi sge, %257, %c0_i32_28 : i32
    %268 = vector.broadcast %267 : i1 to vector<10x10xi1>
    %269 = arith.andi %266, %268 : vector<10x10xi1>
    %270 = arith.extui %269 : vector<10x10xi1> to vector<10x10xi32>
    %271 = arith.sitofp %270 : vector<10x10xi32> to vector<10x10xf32>
    %272 = arith.maximumf %254, %271 : vector<10x10xf32>
    %c15_i32 = arith.constant 15 : i32
    %273 = arith.index_cast %arg0 : i32 to index
    %274 = arith.index_cast %c15_i32 : i32 to index
    %275 = memref.load %arg1[%273, %274] : memref<8x44xi32, #tpu.memory_space<smem>>
    %c22_i32_29 = arith.constant 22 : i32
    %276 = arith.addi %c22_i32_29, %c15_i32 : i32
    %277 = arith.index_cast %arg0 : i32 to index
    %278 = arith.index_cast %276 : i32 to index
    %279 = memref.load %arg1[%277, %278] : memref<8x44xi32, #tpu.memory_space<smem>>
    %280 = vector.broadcast %275 : i32 to vector<10x10xi32>
    %281 = arith.cmpi eq, %0, %280 : vector<10x10xi32>
    %282 = vector.broadcast %279 : i32 to vector<10x10xi32>
    %283 = arith.cmpi eq, %1, %282 : vector<10x10xi32>
    %284 = arith.andi %281, %283 : vector<10x10xi1>
    %c0_i32_30 = arith.constant 0 : i32
    %285 = arith.cmpi sge, %275, %c0_i32_30 : i32
    %286 = vector.broadcast %285 : i1 to vector<10x10xi1>
    %287 = arith.andi %284, %286 : vector<10x10xi1>
    %288 = arith.extui %287 : vector<10x10xi1> to vector<10x10xi32>
    %289 = arith.sitofp %288 : vector<10x10xi32> to vector<10x10xf32>
    %290 = arith.maximumf %272, %289 : vector<10x10xf32>
    %c16_i32 = arith.constant 16 : i32
    %291 = arith.index_cast %arg0 : i32 to index
    %292 = arith.index_cast %c16_i32 : i32 to index
    %293 = memref.load %arg1[%291, %292] : memref<8x44xi32, #tpu.memory_space<smem>>
    %c22_i32_31 = arith.constant 22 : i32
    %294 = arith.addi %c22_i32_31, %c16_i32 : i32
    %295 = arith.index_cast %arg0 : i32 to index
    %296 = arith.index_cast %294 : i32 to index
    %297 = memref.load %arg1[%295, %296] : memref<8x44xi32, #tpu.memory_space<smem>>
    %298 = vector.broadcast %293 : i32 to vector<10x10xi32>
    %299 = arith.cmpi eq, %0, %298 : vector<10x10xi32>
    %300 = vector.broadcast %297 : i32 to vector<10x10xi32>
    %301 = arith.cmpi eq, %1, %300 : vector<10x10xi32>
    %302 = arith.andi %299, %301 : vector<10x10xi1>
    %c0_i32_32 = arith.constant 0 : i32
    %303 = arith.cmpi sge, %293, %c0_i32_32 : i32
    %304 = vector.broadcast %303 : i1 to vector<10x10xi1>
    %305 = arith.andi %302, %304 : vector<10x10xi1>
    %306 = arith.extui %305 : vector<10x10xi1> to vector<10x10xi32>
    %307 = arith.sitofp %306 : vector<10x10xi32> to vector<10x10xf32>
    %308 = arith.maximumf %290, %307 : vector<10x10xf32>
    %c17_i32 = arith.constant 17 : i32
    %309 = arith.index_cast %arg0 : i32 to index
    %310 = arith.index_cast %c17_i32 : i32 to index
    %311 = memref.load %arg1[%309, %310] : memref<8x44xi32, #tpu.memory_space<smem>>
    %c22_i32_33 = arith.constant 22 : i32
    %312 = arith.addi %c22_i32_33, %c17_i32 : i32
    %313 = arith.index_cast %arg0 : i32 to index
    %314 = arith.index_cast %312 : i32 to index
    %315 = memref.load %arg1[%313, %314] : memref<8x44xi32, #tpu.memory_space<smem>>
    %316 = vector.broadcast %311 : i32 to vector<10x10xi32>
    %317 = arith.cmpi eq, %0, %316 : vector<10x10xi32>
    %318 = vector.broadcast %315 : i32 to vector<10x10xi32>
    %319 = arith.cmpi eq, %1, %318 : vector<10x10xi32>
    %320 = arith.andi %317, %319 : vector<10x10xi1>
    %c0_i32_34 = arith.constant 0 : i32
    %321 = arith.cmpi sge, %311, %c0_i32_34 : i32
    %322 = vector.broadcast %321 : i1 to vector<10x10xi1>
    %323 = arith.andi %320, %322 : vector<10x10xi1>
    %324 = arith.extui %323 : vector<10x10xi1> to vector<10x10xi32>
    %325 = arith.sitofp %324 : vector<10x10xi32> to vector<10x10xf32>
    %326 = arith.maximumf %308, %325 : vector<10x10xf32>
    %c18_i32 = arith.constant 18 : i32
    %327 = arith.index_cast %arg0 : i32 to index
    %328 = arith.index_cast %c18_i32 : i32 to index
    %329 = memref.load %arg1[%327, %328] : memref<8x44xi32, #tpu.memory_space<smem>>
    %c22_i32_35 = arith.constant 22 : i32
    %330 = arith.addi %c22_i32_35, %c18_i32 : i32
    %331 = arith.index_cast %arg0 : i32 to index
    %332 = arith.index_cast %330 : i32 to index
    %333 = memref.load %arg1[%331, %332] : memref<8x44xi32, #tpu.memory_space<smem>>
    %334 = vector.broadcast %329 : i32 to vector<10x10xi32>
    %335 = arith.cmpi eq, %0, %334 : vector<10x10xi32>
    %336 = vector.broadcast %333 : i32 to vector<10x10xi32>
    %337 = arith.cmpi eq, %1, %336 : vector<10x10xi32>
    %338 = arith.andi %335, %337 : vector<10x10xi1>
    %c0_i32_36 = arith.constant 0 : i32
    %339 = arith.cmpi sge, %329, %c0_i32_36 : i32
    %340 = vector.broadcast %339 : i1 to vector<10x10xi1>
    %341 = arith.andi %338, %340 : vector<10x10xi1>
    %342 = arith.extui %341 : vector<10x10xi1> to vector<10x10xi32>
    %343 = arith.sitofp %342 : vector<10x10xi32> to vector<10x10xf32>
    %344 = arith.maximumf %326, %343 : vector<10x10xf32>
    %c19_i32 = arith.constant 19 : i32
    %345 = arith.index_cast %arg0 : i32 to index
    %346 = arith.index_cast %c19_i32 : i32 to index
    %347 = memref.load %arg1[%345, %346] : memref<8x44xi32, #tpu.memory_space<smem>>
    %c22_i32_37 = arith.constant 22 : i32
    %348 = arith.addi %c22_i32_37, %c19_i32 : i32
    %349 = arith.index_cast %arg0 : i32 to index
    %350 = arith.index_cast %348 : i32 to index
    %351 = memref.load %arg1[%349, %350] : memref<8x44xi32, #tpu.memory_space<smem>>
    %352 = vector.broadcast %347 : i32 to vector<10x10xi32>
    %353 = arith.cmpi eq, %0, %352 : vector<10x10xi32>
    %354 = vector.broadcast %351 : i32 to vector<10x10xi32>
    %355 = arith.cmpi eq, %1, %354 : vector<10x10xi32>
    %356 = arith.andi %353, %355 : vector<10x10xi1>
    %c0_i32_38 = arith.constant 0 : i32
    %357 = arith.cmpi sge, %347, %c0_i32_38 : i32
    %358 = vector.broadcast %357 : i1 to vector<10x10xi1>
    %359 = arith.andi %356, %358 : vector<10x10xi1>
    %360 = arith.extui %359 : vector<10x10xi1> to vector<10x10xi32>
    %361 = arith.sitofp %360 : vector<10x10xi32> to vector<10x10xf32>
    %362 = arith.maximumf %344, %361 : vector<10x10xf32>
    %c20_i32 = arith.constant 20 : i32
    %363 = arith.index_cast %arg0 : i32 to index
    %364 = arith.index_cast %c20_i32 : i32 to index
    %365 = memref.load %arg1[%363, %364] : memref<8x44xi32, #tpu.memory_space<smem>>
    %c22_i32_39 = arith.constant 22 : i32
    %366 = arith.addi %c22_i32_39, %c20_i32 : i32
    %367 = arith.index_cast %arg0 : i32 to index
    %368 = arith.index_cast %366 : i32 to index
    %369 = memref.load %arg1[%367, %368] : memref<8x44xi32, #tpu.memory_space<smem>>
    %370 = vector.broadcast %365 : i32 to vector<10x10xi32>
    %371 = arith.cmpi eq, %0, %370 : vector<10x10xi32>
    %372 = vector.broadcast %369 : i32 to vector<10x10xi32>
    %373 = arith.cmpi eq, %1, %372 : vector<10x10xi32>
    %374 = arith.andi %371, %373 : vector<10x10xi1>
    %c0_i32_40 = arith.constant 0 : i32
    %375 = arith.cmpi sge, %365, %c0_i32_40 : i32
    %376 = vector.broadcast %375 : i1 to vector<10x10xi1>
    %377 = arith.andi %374, %376 : vector<10x10xi1>
    %378 = arith.extui %377 : vector<10x10xi1> to vector<10x10xi32>
    %379 = arith.sitofp %378 : vector<10x10xi32> to vector<10x10xf32>
    %380 = arith.maximumf %362, %379 : vector<10x10xf32>
    %c21_i32 = arith.constant 21 : i32
    %381 = arith.index_cast %arg0 : i32 to index
    %382 = arith.index_cast %c21_i32 : i32 to index
    %383 = memref.load %arg1[%381, %382] : memref<8x44xi32, #tpu.memory_space<smem>>
    %c22_i32_41 = arith.constant 22 : i32
    %384 = arith.addi %c22_i32_41, %c21_i32 : i32
    %385 = arith.index_cast %arg0 : i32 to index
    %386 = arith.index_cast %384 : i32 to index
    %387 = memref.load %arg1[%385, %386] : memref<8x44xi32, #tpu.memory_space<smem>>
    %388 = vector.broadcast %383 : i32 to vector<10x10xi32>
    %389 = arith.cmpi eq, %0, %388 : vector<10x10xi32>
    %390 = vector.broadcast %387 : i32 to vector<10x10xi32>
    %391 = arith.cmpi eq, %1, %390 : vector<10x10xi32>
    %392 = arith.andi %389, %391 : vector<10x10xi1>
    %c0_i32_42 = arith.constant 0 : i32
    %393 = arith.cmpi sge, %383, %c0_i32_42 : i32
    %394 = vector.broadcast %393 : i1 to vector<10x10xi1>
    %395 = arith.andi %392, %394 : vector<10x10xi1>
    %396 = arith.extui %395 : vector<10x10xi1> to vector<10x10xi32>
    %397 = arith.sitofp %396 : vector<10x10xi32> to vector<10x10xf32>
    %398 = arith.maximumf %380, %397 : vector<10x10xf32>
    %c22_i32_43 = arith.constant 22 : i32
    %399 = arith.cmpi eq, %0, %1 : vector<10x10xi32>
    %400 = arith.extui %399 : vector<10x10xi1> to vector<10x10xi32>
    %401 = arith.sitofp %400 : vector<10x10xi32> to vector<10x10xf32>
    %402 = arith.addf %398, %401 : vector<10x10xf32>
    %cst_44 = arith.constant dense<0.000000e+00> : vector<10xf32>
    %403 = vector.multi_reduction <add>, %398, %cst_44 [0] : vector<10x10xf32> to vector<10xf32>
    %404 = vector.shape_cast %403 : vector<10xf32> to vector<1x10xf32>
    %cst_45 = arith.constant 1.000000e+00 : f32
    %405 = vector.broadcast %cst_45 : f32 to vector<1x10xf32>
    %406 = arith.addf %404, %405 : vector<1x10xf32>
    %407 = math.rsqrt %406 : vector<1x10xf32>
    %cst_46 = arith.constant dense<0.000000e+00> : vector<10xf32>
    %408 = vector.multi_reduction <add>, %398, %cst_46 [1] : vector<10x10xf32> to vector<10xf32>
    %409 = vector.shape_cast %408 : vector<10xf32> to vector<10x1xf32>
    %cst_47 = arith.constant 1.000000e+00 : f32
    %410 = vector.broadcast %cst_47 : f32 to vector<10x1xf32>
    %411 = arith.addf %409, %410 : vector<10x1xf32>
    %412 = math.rsqrt %411 : vector<10x1xf32>
    %413 = vector.broadcast %412 : vector<10x1xf32> to vector<10x10xf32>
    %414 = arith.mulf %413, %402 : vector<10x10xf32>
    %415 = vector.broadcast %407 : vector<1x10xf32> to vector<10x10xf32>
    %416 = arith.mulf %414, %415 : vector<10x10xf32>
    %c0 = arith.constant 0 : index
    %c0_48 = arith.constant 0 : index
    %c0_49 = arith.constant 0 : index
    %417 = vector.load %arg2[%c0, %c0_48, %c0_49] : memref<1x10x20xf32, #tpu.memory_space<vmem>>, vector<1x10x20xf32>
    %418 = vector.shape_cast %417 : vector<1x10x20xf32> to vector<10x20xf32>
    %c0_50 = arith.constant 0 : index
    %c0_51 = arith.constant 0 : index
    %c0_52 = arith.constant 0 : index
    %419 = vector.load %arg3[%c0_50, %c0_51, %c0_52] : memref<5x32x128xf32, #tpu.memory_space<vmem>>, vector<1x20x10xf32>
    %420 = vector.shape_cast %419 : vector<1x20x10xf32> to vector<20x10xf32>
    %cst_53 = arith.constant dense<0.000000e+00> : vector<10x10xf32>
    %421 = tpu.matmul %418, %420, %cst_53 {dimension_numbers = #tpu.dot_dimension_numbers<[1], [0], [0], [1], [0, 0, 1, 1], [], []>} : vector<10x20xf32>, vector<20x10xf32>, vector<10x10xf32> -> vector<10x10xf32>
    %cst_54 = arith.constant dense<0.000000e+00> : vector<10x10xf32>
    %422 = tpu.matmul %416, %421, %cst_54 {dimension_numbers = #tpu.dot_dimension_numbers<[1], [0], [0], [1], [0, 0, 1, 1], [], []>} : vector<10x10xf32>, vector<10x10xf32>, vector<10x10xf32> -> vector<10x10xf32>
    %cst_55 = arith.constant 0.000000e+00 : f32
    %423 = vector.broadcast %cst_55 : f32 to vector<10x10xf32>
    %424 = arith.cmpf oge, %422, %423 : vector<10x10xf32>
    %cst_56 = arith.constant 0.00999999977 : f32
    %425 = vector.broadcast %cst_56 : f32 to vector<10x10xf32>
    %426 = arith.mulf %425, %422 : vector<10x10xf32>
    %427 = arith.select %424, %422, %426 : vector<10x10xi1>, vector<10x10xf32>
    %c1 = arith.constant 1 : index
    %c0_57 = arith.constant 0 : index
    %c0_58 = arith.constant 0 : index
    %428 = vector.load %arg3[%c1, %c0_57, %c0_58] : memref<5x32x128xf32, #tpu.memory_space<vmem>>, vector<1x10x15xf32>
    %429 = vector.shape_cast %428 : vector<1x10x15xf32> to vector<10x15xf32>
    %cst_59 = arith.constant dense<0.000000e+00> : vector<10x15xf32>
    %430 = tpu.matmul %427, %429, %cst_59 {dimension_numbers = #tpu.dot_dimension_numbers<[1], [0], [0], [1], [0, 0, 1, 1], [], []>} : vector<10x10xf32>, vector<10x15xf32>, vector<10x15xf32> -> vector<10x15xf32>
    %cst_60 = arith.constant dense<0.000000e+00> : vector<10x15xf32>
    %431 = tpu.matmul %416, %430, %cst_60 {dimension_numbers = #tpu.dot_dimension_numbers<[1], [0], [0], [1], [0, 0, 1, 1], [], []>} : vector<10x10xf32>, vector<10x15xf32>, vector<10x15xf32> -> vector<10x15xf32>
    %cst_61 = arith.constant 0.000000e+00 : f32
    %432 = vector.broadcast %cst_61 : f32 to vector<10x15xf32>
    %433 = arith.cmpf ogt, %431, %432 : vector<10x15xf32>
    %cst_62 = arith.constant 0.000000e+00 : f32
    %434 = vector.broadcast %cst_62 : f32 to vector<10x15xf32>
    %435 = arith.minimumf %431, %434 : vector<10x15xf32>
    %436 = math.exp %435 : vector<10x15xf32>
    %cst_63 = arith.constant 1.000000e+00 : f32
    %437 = vector.broadcast %cst_63 : f32 to vector<10x15xf32>
    %438 = arith.subf %436, %437 : vector<10x15xf32>
    %cst_64 = arith.constant 1.000000e+00 : f32
    %439 = vector.broadcast %cst_64 : f32 to vector<10x15xf32>
    %440 = arith.mulf %439, %438 : vector<10x15xf32>
    %441 = arith.select %433, %431, %440 : vector<10x15xi1>, vector<10x15xf32>
    %c2 = arith.constant 2 : index
    %c0_65 = arith.constant 0 : index
    %c0_66 = arith.constant 0 : index
    %442 = vector.load %arg3[%c2, %c0_65, %c0_66] : memref<5x32x128xf32, #tpu.memory_space<vmem>>, vector<1x15x10xf32>
    %443 = vector.shape_cast %442 : vector<1x15x10xf32> to vector<15x10xf32>
    %cst_67 = arith.constant dense<0.000000e+00> : vector<10x10xf32>
    %444 = tpu.matmul %441, %443, %cst_67 {dimension_numbers = #tpu.dot_dimension_numbers<[1], [0], [0], [1], [0, 0, 1, 1], [], []>} : vector<10x15xf32>, vector<15x10xf32>, vector<10x10xf32> -> vector<10x10xf32>
    %cst_68 = arith.constant dense<0.000000e+00> : vector<10x10xf32>
    %445 = tpu.matmul %416, %444, %cst_68 {dimension_numbers = #tpu.dot_dimension_numbers<[1], [0], [0], [1], [0, 0, 1, 1], [], []>} : vector<10x10xf32>, vector<10x10xf32>, vector<10x10xf32> -> vector<10x10xf32>
    %cst_69 = arith.constant 5.000000e-01 : f32
    %446 = vector.broadcast %cst_69 : f32 to vector<10x10xf32>
    %447 = arith.mulf %446, %445 : vector<10x10xf32>
    %448 = math.tanh %447 : vector<10x10xf32>
    %cst_70 = arith.constant 5.000000e-01 : f32
    %449 = vector.broadcast %cst_70 : f32 to vector<10x10xf32>
    %450 = arith.mulf %449, %448 : vector<10x10xf32>
    %cst_71 = arith.constant 5.000000e-01 : f32
    %451 = vector.broadcast %cst_71 : f32 to vector<10x10xf32>
    %452 = arith.addf %450, %451 : vector<10x10xf32>
    %453 = arith.mulf %445, %452 : vector<10x10xf32>
    %c3 = arith.constant 3 : index
    %c0_72 = arith.constant 0 : index
    %c0_73 = arith.constant 0 : index
    %454 = vector.load %arg3[%c3, %c0_72, %c0_73] : memref<5x32x128xf32, #tpu.memory_space<vmem>>, vector<1x10x15xf32>
    %455 = vector.shape_cast %454 : vector<1x10x15xf32> to vector<10x15xf32>
    %cst_74 = arith.constant dense<0.000000e+00> : vector<10x15xf32>
    %456 = tpu.matmul %453, %455, %cst_74 {dimension_numbers = #tpu.dot_dimension_numbers<[1], [0], [0], [1], [0, 0, 1, 1], [], []>} : vector<10x10xf32>, vector<10x15xf32>, vector<10x15xf32> -> vector<10x15xf32>
    %cst_75 = arith.constant dense<0.000000e+00> : vector<10x15xf32>
    %457 = tpu.matmul %416, %456, %cst_75 {dimension_numbers = #tpu.dot_dimension_numbers<[1], [0], [0], [1], [0, 0, 1, 1], [], []>} : vector<10x10xf32>, vector<10x15xf32>, vector<10x15xf32> -> vector<10x15xf32>
    %cst_76 = arith.constant 0.000000e+00 : f32
    %458 = vector.broadcast %cst_76 : f32 to vector<10x15xf32>
    %459 = arith.maximumf %457, %458 : vector<10x15xf32>
    %c4 = arith.constant 4 : index
    %c0_77 = arith.constant 0 : index
    %c0_78 = arith.constant 0 : index
    %460 = vector.load %arg3[%c4, %c0_77, %c0_78] : memref<5x32x128xf32, #tpu.memory_space<vmem>>, vector<1x15x10xf32>
    %461 = vector.shape_cast %460 : vector<1x15x10xf32> to vector<15x10xf32>
    %cst_79 = arith.constant dense<0.000000e+00> : vector<10x10xf32>
    %462 = tpu.matmul %459, %461, %cst_79 {dimension_numbers = #tpu.dot_dimension_numbers<[1], [0], [0], [1], [0, 0, 1, 1], [], []>} : vector<10x15xf32>, vector<15x10xf32>, vector<10x10xf32> -> vector<10x10xf32>
    %cst_80 = arith.constant dense<0.000000e+00> : vector<10x10xf32>
    %463 = tpu.matmul %416, %462, %cst_80 {dimension_numbers = #tpu.dot_dimension_numbers<[1], [0], [0], [1], [0, 0, 1, 1], [], []>} : vector<10x10xf32>, vector<10x10xf32>, vector<10x10xf32> -> vector<10x10xf32>
    %cst_81 = arith.constant dense<0.000000e+00> : vector<10x10xf32>
    %464 = tpu.matmul %463, %463, %cst_81 {dimension_numbers = #tpu.dot_dimension_numbers<[1], [1], [0], [0], [0, 0, 1, 0], [], []>} : vector<10x10xf32>, vector<10x10xf32>, vector<10x10xf32> -> vector<10x10xf32>
    %cst_82 = arith.constant 5.000000e-01 : f32
    %465 = vector.broadcast %cst_82 : f32 to vector<10x10xf32>
    %466 = arith.mulf %465, %464 : vector<10x10xf32>
    %467 = math.tanh %466 : vector<10x10xf32>
    %cst_83 = arith.constant 5.000000e-01 : f32
    %468 = vector.broadcast %cst_83 : f32 to vector<10x10xf32>
    %469 = arith.mulf %468, %467 : vector<10x10xf32>
    %cst_84 = arith.constant 5.000000e-01 : f32
    %470 = vector.broadcast %cst_84 : f32 to vector<10x10xf32>
    %471 = arith.addf %469, %470 : vector<10x10xf32>
    %cst_85 = arith.constant 0.000000e+00 : f32
    %472 = vector.broadcast %cst_85 : f32 to vector<10x58xf32>
    %473 = tpu.concatenate %427, %441, %453, %459, %463, %471, %472 in 1 : vector<10x10xf32>, vector<10x15xf32>, vector<10x10xf32>, vector<10x15xf32>, vector<10x10xf32>, vector<10x10xf32>, vector<10x58xf32> -> vector<10x128xf32>
    %c0_86 = arith.constant 0 : index
    %c0_87 = arith.constant 0 : index
    %c0_88 = arith.constant 0 : index
    %474 = vector.load %arg4[%c0_86, %c0_87, %c0_88] : memref<1x10x128xf32, #tpu.memory_space<vmem>>, vector<1x10x128xf32>
    %475 = vector.shape_cast %474 : vector<1x10x128xf32> to vector<10x128xf32>
    %476 = vector.shape_cast %473 : vector<10x128xf32> to vector<1x10x128xf32>
    tpu.vector_store %arg4[%c0_86, %c0_87, %c0_88], %476 {strides = array<i32>} : memref<1x10x128xf32, #tpu.memory_space<vmem>>, vector<1x10x128xf32>,
    return
  }
  func.func @transform_0(%arg0: i32, %arg1: memref<8x44xi32, #tpu.memory_space<smem>>) -> (i32, i32, i32) {
    %c0_i32 = arith.constant 0 : i32
    %c0_i32_0 = arith.constant 0 : i32
    %c0_i32_1 = arith.constant 0 : i32
    return %arg0, %c0_i32, %c0_i32_0 : i32, i32, i32
  }
  func.func @transform_1(%arg0: i32, %arg1: memref<8x44xi32, #tpu.memory_space<smem>>) -> (i32, i32, i32) {
    %c0_i32 = arith.constant 0 : i32
    %c0_i32_0 = arith.constant 0 : i32
    %c0_i32_1 = arith.constant 0 : i32
    %c0_i32_2 = arith.constant 0 : i32
    return %c0_i32, %c0_i32_0, %c0_i32_1 : i32, i32, i32
  }
  func.func @transform_2(%arg0: i32, %arg1: memref<8x44xi32, #tpu.memory_space<smem>>) -> (i32, i32, i32) {
    %c0_i32 = arith.constant 0 : i32
    %c0_i32_0 = arith.constant 0 : i32
    %c0_i32_1 = arith.constant 0 : i32
    return %arg0, %c0_i32, %c0_i32_0 : i32, i32, i32
  }
}

</mosaic_0001>

<bundles_post_ra>
// kernel: tpu_custom_call.1
= control target key start
LH: loop header
LB: loop body
LE: loop exit
PB: predicated region body
PF: predicated region fallthrough
CT: control target
= control target key end

     0   :  { %s3358_s0 = inlined_call_operand.vmem [shape: s32[8,44], index: 0, kind: input, shape index: {}]   ;;  %s3359_s1 = inlined_call_operand.vmem [shape: f32[8,10,20], index: 1, kind: input, shape index: {}]   ;;  %s3360_s2 = inlined_call_operand.vmem [shape: f32[5,32,128], index: 2, kind: input, shape index: {}]   ;;  %s3361_s3 = inlined_call_operand.vmem [shape: f32[8,10,128], index: 3, kind: output, shape index: {}]  }
   0x1   :  { %s8_s14 = sshll.u32 %s3358_s0, 4  ;;  %s9_s14 = int_to_ptr.vmem [resolvable:$true] %s8_s14 }
   0x2   :  { %s2084_s15 = scalar_lea.vmem %s9_s14, 128  ;;  %p2089_p1 = scmp.lt.s32.totalorder %s9_s14, %s9_s14 }
   0x3   :  { %p2085_p0 = scmp.ne.s32.totalorder %s9_s14, %s2084_s15  ;;  %p2090_p2 = scmp.lt.s32.totalorder %s2084_s15, %s2084_s15 }
   0x5   :  { %p2091_p3 = por %p2090_p2, %p2089_p1 }
   0x7   :  { %p2092_p4 = pnand %p2091_p3, %p2085_p0 }
   0x9   :  { %2095 = shalt.err (!%p2092_p4)  }
   0xa   :  { %s2106_s16 = smov [#allocation3]  }
   0xb   :  { %11 = dma.vmem_to_smem %s9_s14, 128, %s2106_s16, [#allocation2] }
   0xc   :  { %2100 = dma.done.wait [#allocation2], 128 }
   0xd   :  { %2101 = vsyncadd [#allocation2], 4294967168 }
   0xe   :  { %13 = sfence }
   0xf   :  { %s2137_s17 = smov 0  }
  0x10 LB: > { %s1758_s0 = sadd.s32 4294967295, %s2104_s17   ;;  %p1762_p5 = scmp.ge.s32.totalorder %s2104_s17, 1  ;;  %s2104_s17 = sphi %s2137_s17, %s19_s17  }
  0x11   : > { %p119_p6 = scmp.lt.s32.totalorder %s2104_s17, 9 }
  0x13   : > { %p120_p7 = pnand %p1762_p5, %p119_p6 }
  0x14   : > { %v697_v0 = vld [vmem:[%s3360_s2] sm:$0xff] (!%p120_p7)  ;;  %v698_v1 = vld [vmem:[%s3360_s2 + $0x8] sm:$0xff] (!%p120_p7)  ;;  %p141_p8 = scmp.lt.s32.totalorder (!%p120_p7), %s1758_s0, 7  ;;  %v151_v3 = vlaneseq (!%p120_p7)  ;;  %s2151_s22 = sshll.u32 (!%p120_p7), %s1758_s0, 7  ;;  %v699_v4 = vld [vmem:[%s3360_s2 + $0x10] sm:$0xf] (!%p120_p7) }
  0x15   : > { %123 = sbr.rel (%p120_p7) target bundleno = 2630 (0xa46), region = 28  ;;  %v1986_v2 = vpack.c.bf16 (!%p120_p7), %v698_v1, %v697_v0  ;;  %vm707_vm0 = vcmask (!%p120_p7), 1043456   ;;  %s2159_s25 = sld [smem:[#allocation3 + %s2151_s22]] (!%p120_p7)  ;;  %vm700_vm1 = vcmask (!%p120_p7), 162816   ;;  %v2107_v22 = vmov (!%p120_p7), 0.0  }
  0x16   : > { %s158_s26 = sadd.s32 (!%p120_p7), 22, %s2151_s22  ;;  %v2169_v5 = vshrl.u32 (!%p120_p7), %v151_v3, 7  ;;  %s179_s5 = sadd.s32 (!%p120_p7), 1, %s2151_s22  ;;  %v2174_v8 = vand.u32 (!%p120_p7), 127, %v151_v3  ;;  %v3481_v24 = vmov (!%p120_p7), 0  ;;  %v3500_v49 = vmov (!%p120_p7), 0 }
  0x17   : > { %1987 = vmatprep.subr.bf16.mxu0 (!%p120_p7), %v1986_v2  ;;  %s159_s28 = sld [smem:[#allocation3 + %s158_s26]] (!%p120_p7)  ;;  %s181_s6 = sadd.s32 (!%p120_p7), 23, %s2151_s22 }
  0x18   : > { %1989 = vmatpush3.bf16.msra.mxu0 (!%p120_p7), %v1986_v2  ;;  %s2176_s7 = sld [smem:[#allocation3 + %s179_s5]] (!%p120_p7)  ;;  %v2179_v9 = vadd.s32 (!%p120_p7), 8, %v2169_v5  ;;  %s202_s9 = sadd.s32 (!%p120_p7), 2, %s2151_s22 }
  0x19   : > { %1911 = vmatprep.subr.msk.mxu0 (!%p120_p7), %vm707_vm0, %v699_v4  ;;  %s182_s8 = sld [smem:[#allocation3 + %s181_s6]] (!%p120_p7)  ;;  %s204_s10 = sadd.s32 (!%p120_p7), 24, %s2151_s22 }
  0x1a   : > { %s2187_s11 = sld [smem:[#allocation3 + %s202_s9]] (!%p120_p7)  ;;  %s225_s13 = sadd.s32 (!%p120_p7), 3, %s2151_s22 }
  0x1b   : > { %v160_v10 = vstv (!%p120_p7), %s2159_s25  ;;  %p167_p9 = scmp.ge.s32.totalorder (!%p120_p7), %s2159_s25, 0  ;;  %s2194_s12 = sld [smem:[#allocation3 + %s204_s10]] (!%p120_p7) }
  0x1c   : > { %s3565_s0 = smov (!%p141_p8, %s1758_s0), 7  ;;  %1912 = vmatpush3.msk.msra.mxu0 %vm707_vm0, %v699_v4  ;;  %vm2190_vm2 = vcmp.eq.s32.totalorder %v2169_v5, %v160_v10  ;;  %vm2203_vm4 = vcmp.eq.s32.totalorder %v2179_v9, %v160_v10  ;;  %s2211_s15 = sld [smem:[#allocation3 + %s225_s13]] }
  0x1d   : > { %s1860_s27 = sshll.u32 %s3565_s0, 4  ;;  %v163_v12 = vstv %s159_s28  ;;  %s227_s16 = sadd.s32 25, %s2151_s22 }
  0x1e   : > { %s145_s4 = scalar_lea.vmem %s3359_s1, %s1860_s27  ;;  %vm2198_vm3 = vcmp.eq.s32.totalorder %v2174_v8, %v163_v12  ;;  %v183_v16 = vstv %s2176_s7  ;;  %p190_p10 = scmp.ge.s32.totalorder %s2176_s7, 0 }
  0x1f   : > { %v695_v6 = vld [vmem:[%s145_s4] sm:$0xff]  ;;  %v696_v7 = vld [vmem:[%s145_s4 + $0x8] sm:$0x3]  ;;  %s168_s14 = scalar_select %p167_p9, 1, 0  ;;  %vm165_vm5 = vmand %vm2190_vm2, %vm2198_vm3  ;;  %v186_v17 = vstv %s182_s8  ;;  %vm2223_vm7 = vcmp.eq.s32.totalorder %v2169_v5, %v183_v16  ;;  %vm2275_vm15 = vcmp.eq.s32.totalorder %v2179_v9, %v183_v16 }
  0x20   : > { %1913 = vmatprep.mubr.msk.f32.mxu0 %vm700_vm1, %v695_v6  ;;  %s2216_s18 = sld [smem:[#allocation3 + %s227_s16]]  ;;  %vm2228_vm8 = vcmp.eq.s32.totalorder %v2174_v8, %v186_v17  ;;  %s248_s19 = sadd.s32 4, %s2151_s22  ;;  %vm166_vm9 = vmand %vm2203_vm4, %vm2198_vm3  ;;  %v206_v21 = vstv %s2187_s11 }
  0x21   : > { %1914 = vmatmul.mubr.msk.f32.vlgmr.msra.gmra.mrb[0].mxu0 %vm700_vm1, %v696_v7  ;;  %v169_v15 = vstv %s168_s14  ;;  %s250_s20 = sadd.s32 26, %s2151_s22  ;;  %vm188_vm11 = vmand %vm2223_vm7, %vm2228_vm8  ;;  %vm2247_vm12 = vcmp.eq.s32.totalorder %v2169_v5, %v206_v21  ;;  %v209_v25 = vstv %s2194_s12  ;;  %p213_p11 = scmp.ge.s32.totalorder %s2187_s11, 0 }
  0x22   : > { %vm2218_vm6 = vcmp.eq.s32.totalorder %v169_v15, 1  ;;  %s191_s21 = scalar_select %p190_p10, 1, 0  ;;  %vm2256_vm13 = vcmp.eq.s32.totalorder %v2174_v8, %v209_v25  ;;  %v229_v32 = vstv %s2211_s15 }
  0x23   : > { %vm171_vm10 = vmand %vm165_vm5, %vm2218_vm6  ;;  %s2253_s23 = sld [smem:[#allocation3 + %s248_s19]]  ;;  %s271_s25 = sadd.s32 5, %s2151_s22  ;;  %vm2296_vm3 = vcmp.eq.s32.totalorder %v2169_v5, %v229_v32 }
  0x24   : > { %v1768_v23 = vsel %vm171_vm10, 1.0, %v2107_v22  ;;  %v192_v27 = vstv %s191_s21  ;;  %s2260_s24 = sld [smem:[#allocation3 + %s250_s20]]  ;;  %vm2270_vm14 = vmand %vm166_vm9, %vm2218_vm6  ;;  %p236_p12 = scmp.ge.s32.totalorder %s2211_s15, 0  ;;  %vm2325_vm9 = vcmp.eq.s32.totalorder %v2179_v9, %v206_v21 }
  0x25   : > { %v177_v26 = vmax.f32 %v1768_v23, 0.0  ;;  %vm2279_vm0 = vcmp.eq.s32.totalorder %v192_v27, 1  ;;  %vm211_vm1 = vmand %vm2247_vm12, %vm2256_vm13  ;;  %s214_s26 = scalar_select %p213_p11, 1, 0  ;;  %v1769_v50 = vsel %vm2270_vm14, 1.0, %v2107_v22 }
  0x26   : > { %vm194_vm2 = vmand %vm188_vm11, %vm2279_vm0  ;;  %v232_v34 = vstv %s2216_s18  ;;  %s2302_s28 = sld [smem:[#allocation3 + %s271_s25]]  ;;  %s273_s29 = sadd.s32 27, %s2151_s22  ;;  %v178_v58 = vmax.f32 %v1769_v50, 0.0 }
  0x27   : > { %v1770_v35 = vsel %vm194_vm2, 1.0, %v2107_v22  ;;  %v215_v36 = vstv %s214_s26  ;;  %vm2306_vm4 = vcmp.eq.s32.totalorder %v2174_v8, %v232_v34  ;;  %s294_s30 = sadd.s32 6, %s2151_s22  ;;  %vm189_vm5 = vmand %vm2275_vm15, %vm2228_vm8  ;;  %s2338_s5 = sld [smem:[#allocation3 + %s273_s29]] }
  0x28   : > { %v200_v38 = vmax.f32 %v177_v26, %v1770_v35  ;;  %vm2316_vm6 = vcmp.eq.s32.totalorder %v215_v36, 1  ;;  %vm234_vm7 = vmand %vm2296_vm3, %vm2306_vm4  ;;  %s237_s4 = scalar_select %p236_p12, 1, 0 }
  0x29   : > { %vm217_vm10 = vmand %vm211_vm1, %vm2316_vm6  ;;  %v252_v41 = vstv %s2253_s23  ;;  %p259_p13 = scmp.ge.s32.totalorder %s2253_s23, 0  ;;  %s2347_s6 = sld [smem:[#allocation3 + %s294_s30]] }
  0x2a   : > { %v1772_v42 = vsel %vm217_vm10, 1.0, %v2107_v22  ;;  %v238_v43 = vstv %s237_s4  ;;  %vm2342_vm11 = vcmp.eq.s32.totalorder %v2169_v5, %v252_v41  ;;  %v255_v45 = vstv %s2260_s24  ;;  %s296_s7 = sadd.s32 28, %s2151_s22  ;;  %vm2357_vm12 = vmand %vm189_vm5, %vm2279_vm0  ;;  %s317_s10 = sadd.s32 7, %s2151_s22 }
  0x2b   : > { %v223_v47 = vmax.f32 %v200_v38, %v1772_v42  ;;  %vm2361_vm1 = vcmp.eq.s32.totalorder %v238_v43, 1  ;;  %vm2366_vm2 = vcmp.eq.s32.totalorder %v2174_v8, %v255_v45  ;;  %s260_s8 = scalar_select %p259_p13, 1, 0  ;;  %vm212_vm8 = vmand %vm2325_vm9, %vm2256_vm13  ;;  %vm2396_vm0 = vcmp.eq.s32.totalorder %v2179_v9, %v229_v32 }
  0x2c   : > { %vm240_vm15 = vmand %vm234_vm7, %vm2361_vm1  ;;  %v275_v51 = vstv %s2302_s28  ;;  %p282_p0 = scmp.ge.s32.totalorder %s2302_s28, 0  ;;  %s2386_s9 = sld [smem:[#allocation3 + %s296_s7]]  ;;  %v1771_v61 = vsel %vm2357_vm12, 1.0, %v2107_v22  ;;  %v3542_v38 = vmov 0 }
  0x2d   : > { %v1774_v52 = vsel %vm240_vm15, 1.0, %v2107_v22  ;;  %vm257_vm14 = vmand %vm2342_vm11, %vm2366_vm2  ;;  %v261_v53 = vstv %s260_s8  ;;  %s319_s11 = sadd.s32 29, %s2151_s22  ;;  %vm2405_vm5 = vcmp.eq.s32.totalorder %v2169_v5, %v275_v51  ;;  %v278_v60 = vstv %s2338_s5  ;;  %s2423_s13 = sld [smem:[#allocation3 + %s317_s10]] }
  0x2e   : > { %v246_v55 = vmax.f32 %v223_v47, %v1774_v52  ;;  %vm2400_vm3 = vcmp.eq.s32.totalorder %v261_v53, 1  ;;  %s283_s12 = scalar_select %p282_p0, 1, 0  ;;  %vm2416_vm7 = vmand %vm212_vm8, %vm2316_vm6  ;;  %vm2432_vm13 = vcmp.eq.s32.totalorder %v2174_v8, %v278_v60  ;;  %v201_v7 = vmax.f32 %v178_v58, %v1771_v61 }
  0x2f   : > { %vm263_vm10 = vmand %vm257_vm14, %vm2400_vm3  ;;  %s2425_s14 = sld [smem:[#allocation3 + %s319_s11]]  ;;  %v298_v1 = vstv %s2347_s6  ;;  %p305_p1 = scmp.ge.s32.totalorder %s2347_s6, 0  ;;  %vm2465_vm15 = vcmp.eq.s32.totalorder %v2179_v9, %v252_v41  ;;  %v1773_v13 = vsel %vm2416_vm7, 1.0, %v2107_v22 }
  0x30   : > { %v1776_v62 = vsel %vm263_vm10, 1.0, %v2107_v22  ;;  %v284_v0 = vstv %s283_s12  ;;  %s340_s15 = sadd.s32 8, %s2151_s22  ;;  %vm235_vm6 = vmand %vm2396_vm0, %vm2306_vm4  ;;  %vm2454_vm12 = vcmp.eq.s32.totalorder %v2169_v5, %v298_v1  ;;  %s342_s18 = sadd.s32 30, %s2151_s22  ;;  %v224_v23 = vmax.f32 %v201_v7, %v1773_v13 }
  0x31   : > { %v269_v2 = vmax.f32 %v246_v55, %v1776_v62  ;;  %vm280_vm9 = vmand %vm2405_vm5, %vm2432_vm13  ;;  %vm2447_vm11 = vcmp.eq.s32.totalorder %v284_v0, 1  ;;  %s2458_s16 = sld [smem:[#allocation3 + %s340_s15]]  ;;  %s363_s21 = sadd.s32 9, %s2151_s22 }
  0x32   : > { %vm286_vm8 = vmand %vm280_vm9, %vm2447_vm11  ;;  %v301_v6 = vstv %s2386_s9  ;;  %s306_s19 = scalar_select %p305_p1, 1, 0  ;;  %vm2527_vm9 = vcmp.eq.s32.totalorder %v2179_v9, %v275_v51 }
  0x33   : > { %v1778_v11 = vsel %vm286_vm8, 1.0, %v2107_v22  ;;  %vm2471_vm14 = vcmp.eq.s32.totalorder %v2174_v8, %v301_v6  ;;  %s2475_s20 = sld [smem:[#allocation3 + %s342_s18]]  ;;  %vm2488_vm5 = vmand %vm235_vm6, %vm2361_vm1  ;;  %s365_s24 = sadd.s32 31, %s2151_s22  ;;  %v321_v18 = vstv %s2423_s13 }
  0x34   : > { %vm303_vm10 = vmand %vm2454_vm12, %vm2471_vm14  ;;  %v307_v15 = vstv %s306_s19  ;;  %s2496_s23 = sld [smem:[#allocation3 + %s363_s21]]  ;;  %v292_v16 = vmax.f32 %v269_v2, %v1778_v11  ;;  %p328_p2 = scmp.ge.s32.totalorder %s2423_s13, 0  ;;  %vm2515_vm0 = vcmp.eq.s32.totalorder %v2169_v5, %v321_v18  ;;  %v1775_v27 = vsel %vm2488_vm5, 1.0, %v2107_v22 }
  0x35   : > { %vm2499_vm7 = vcmp.eq.s32.totalorder %v307_v15, 1  ;;  %v324_v19 = vstv %s2425_s14  ;;  %s2506_s25 = sld [smem:[#allocation3 + %s365_s24]]  ;;  %vm258_vm4 = vmand %vm2465_vm15, %vm2366_vm2  ;;  %s386_s26 = sadd.s32 10, %s2151_s22  ;;  %v247_v36 = vmax.f32 %v224_v23, %v1775_v27  ;;  %v3529_v27 = vmov 0 }
  0x36   : > { %vm309_vm1 = vmand %vm303_vm10, %vm2499_vm7  ;;  %vm2520_vm6 = vcmp.eq.s32.totalorder %v2174_v8, %v324_v19  ;;  %s388_s28 = sadd.s32 32, %s2151_s22  ;;  %s2541_s30 = sld [smem:[#allocation3 + %s386_s26]] }
  0x37   : > { %v1780_v25 = vsel %vm309_vm1, 1.0, %v2107_v22  ;;  %vm326_vm12 = vmand %vm2515_vm0, %vm2520_vm6  ;;  %s329_s29 = scalar_select %p328_p2, 1, 0  ;;  %v344_v26 = vstv %s2458_s16  ;;  %vm2621_vm0 = vcmp.eq.s32.totalorder %v2179_v9, %v298_v1 }
  0x38   : > { %p351_p3 = scmp.ge.s32.totalorder %s2458_s16, 0  ;;  %vm2550_vm8 = vmand %vm258_vm4, %vm2400_vm3  ;;  %v315_v29 = vmax.f32 %v292_v16, %v1780_v25  ;;  %vm2557_vm5 = vcmp.eq.s32.totalorder %v2169_v5, %v344_v26  ;;  %s2562_s4 = sld [smem:[#allocation3 + %s388_s28]] }
  0x39   : > { %v330_v30 = vstv %s329_s29  ;;  %v347_v32 = vstv %s2475_s20  ;;  %s409_s5 = sadd.s32 11, %s2151_s22  ;;  %vm281_vm2 = vmand %vm2527_vm9, %vm2432_vm13  ;;  %v1777_v40 = vsel %vm2550_vm8, 1.0, %v2107_v22  ;;  %s411_s9 = sadd.s32 33, %s2151_s22 }
  0x3a   : > { %vm2569_vm3 = vcmp.eq.s32.totalorder %v330_v30, 1  ;;  %vm2574_vm15 = vcmp.eq.s32.totalorder %v2174_v8, %v347_v32  ;;  %s352_s7 = scalar_select %p351_p3, 1, 0  ;;  %v367_v35 = vstv %s2496_s23  ;;  %vm2581_vm10 = vmand %vm281_vm2, %vm2447_vm11  ;;  %v270_v48 = vmax.f32 %v247_v36, %v1777_v40 }
  0x3b   : > { %vm332_vm13 = vmand %vm326_vm12, %vm2569_vm3  ;;  %vm2595_vm4 = vcmp.eq.s32.totalorder %v2169_v5, %v367_v35  ;;  %v370_v39 = vstv %s2506_s25  ;;  %p374_p4 = scmp.ge.s32.totalorder %s2496_s23, 0  ;;  %s2601_s8 = sld [smem:[#allocation3 + %s409_s5]]  ;;  %v1779_v57 = vsel %vm2581_vm10, 1.0, %v2107_v22 }
  0x3c   : > { %v1782_v41 = vsel %vm332_vm13, 1.0, %v2107_v22  ;;  %vm349_vm11 = vmand %vm2557_vm5, %vm2574_vm15  ;;  %v353_v42 = vstv %s352_s7  ;;  %vm2612_vm1 = vcmp.eq.s32.totalorder %v2174_v8, %v370_v39  ;;  %s432_s10 = sadd.s32 12, %s2151_s22  ;;  %v390_v47 = vstv %s2541_s30  ;;  %p397_p5 = scmp.ge.s32.totalorder %s2541_s30, 0 }
  0x3d   : > { %v338_v45 = vmax.f32 %v315_v29, %v1782_v41  ;;  %vm2625_vm9 = vcmp.eq.s32.totalorder %v353_v42, 1  ;;  %vm372_vm12 = vmand %vm2595_vm4, %vm2612_vm1  ;;  %s375_s11 = scalar_select %p374_p4, 1, 0  ;;  %vm2640_vm5 = vcmp.eq.s32.totalorder %v2179_v9, %v321_v18  ;;  %vm2648_vm2 = vcmp.eq.s32.totalorder %v2169_v5, %v390_v47 }
  0x3e   : > { %vm355_vm8 = vmand %vm349_vm11, %vm2625_vm9  ;;  %s2637_s6 = sld [smem:[#allocation3 + %s411_s9]]  ;;  %v393_v53 = vstv %s2562_s4  ;;  %s434_s13 = sadd.s32 34, %s2151_s22  ;;  %v293_v1 = vmax.f32 %v270_v48, %v1779_v57  ;;  %v3493_v39 = vmov 0 }
  0x3f   : > { %v1784_v50 = vsel %vm355_vm8, 1.0, %v2107_v22  ;;  %v376_v51 = vstv %s375_s11  ;;  %s2653_s12 = sld [smem:[#allocation3 + %s432_s10]]  ;;  %vm304_vm13 = vmand %vm2621_vm0, %vm2471_vm14  ;;  %vm2665_vm8 = vcmp.eq.s32.totalorder %v2174_v8, %v393_v53  ;;  %s455_s18 = sadd.s32 13, %s2151_s22 }
  0x40   : > { %v361_v54 = vmax.f32 %v338_v45, %v1784_v50  ;;  %vm2660_vm11 = vcmp.eq.s32.totalorder %v376_v51, 1  ;;  %s398_s14 = scalar_select %p397_p5, 1, 0  ;;  %vm2676_vm14 = vmand %vm304_vm13, %vm2499_vm7  ;;  %vm2726_vm13 = vcmp.eq.s32.totalorder %v2179_v9, %v344_v26 }
  0x41   : > { %vm378_vm0 = vmand %vm372_vm12, %vm2660_vm11  ;;  %v413_v59 = vstv %s2601_s8  ;;  %p420_p6 = scmp.ge.s32.totalorder %s2601_s8, 0  ;;  %s2689_s15 = sld [smem:[#allocation3 + %s434_s13]]  ;;  %v1781_v3 = vsel %vm2676_vm14, 1.0, %v2107_v22 }
  0x42   : > { %v1786_v60 = vsel %vm378_vm0, 1.0, %v2107_v22  ;;  %vm395_vm7 = vmand %vm2648_vm2, %vm2665_vm8  ;;  %v399_v61 = vstv %s398_s14  ;;  %s457_s19 = sadd.s32 35, %s2151_s22  ;;  %vm2705_vm4 = vcmp.eq.s32.totalorder %v2169_v5, %v413_v59  ;;  %s2716_s21 = sld [smem:[#allocation3 + %s455_s18]]  ;;  %v316_v16 = vmax.f32 %v293_v1, %v1781_v3 }
  0x43   : > { %v384_v62 = vmax.f32 %v361_v54, %v1786_v60  ;;  %vm2698_vm10 = vcmp.eq.s32.totalorder %v399_v61, 1  ;;  %s421_s20 = scalar_select %p420_p6, 1, 0  ;;  %vm327_vm12 = vmand %vm2640_vm5, %vm2520_vm6  ;;  %v3509_v60 = vmov 0 }
  0x44   : > { %vm401_vm2 = vmand %vm395_vm7, %vm2698_vm10  ;;  %v416_v2 = vstv %s2637_s6  ;;  %s2718_s24 = sld [smem:[#allocation3 + %s457_s19]]  ;;  %s478_s25 = sadd.s32 14, %s2151_s22 }
  0x45   : > { %v1788_v6 = vsel %vm401_vm2, 1.0, %v2107_v22  ;;  %vm2732_vm6 = vcmp.eq.s32.totalorder %v2174_v8, %v416_v2  ;;  %v422_v10 = vstv %s421_s20  ;;  %v436_v11 = vstv %s2653_s12  ;;  %p443_p7 = scmp.ge.s32.totalorder %s2653_s12, 0  ;;  %vm333_vm5 = vmand %vm327_vm12, %vm2569_vm3  ;;  %s2756_s16 = sld [smem:[#allocation3 + %s478_s25]] }
  0x46   : > { %v407_v12 = vmax.f32 %v384_v62, %v1788_v6  ;;  %vm418_vm14 = vmand %vm2705_vm4, %vm2732_vm6  ;;  %vm2745_vm0 = vcmp.eq.s32.totalorder %v422_v10, 1  ;;  %vm2752_vm7 = vcmp.eq.s32.totalorder %v2169_v5, %v436_v11  ;;  %s480_s26 = sadd.s32 36, %s2151_s22  ;;  %s501_s4 = sadd.s32 15, %s2151_s22  ;;  %v1783_v19 = vsel %vm333_vm5, 1.0, %v2107_v22 }
  0x47   : > { %vm424_vm3 = vmand %vm418_vm14, %vm2745_vm0  ;;  %v439_v15 = vstv %s2689_s15  ;;  %s444_s28 = scalar_select %p443_p7, 1, 0  ;;  %vm2786_vm14 = vcmp.eq.s32.totalorder %v2179_v9, %v367_v35  ;;  %v339_v29 = vmax.f32 %v316_v16, %v1783_v19 }
  0x48   : > { %v1790_v17 = vsel %vm424_vm3, 1.0, %v2107_v22  ;;  %vm2764_vm4 = vcmp.eq.s32.totalorder %v2174_v8, %v439_v15  ;;  %s2768_s29 = sld [smem:[#allocation3 + %s480_s26]]  ;;  %vm350_vm12 = vmand %vm2726_vm13, %vm2574_vm15  ;;  %s503_s7 = sadd.s32 37, %s2151_s22  ;;  %v459_v25 = vstv %s2716_s21  ;;  %v3520_v15 = vmov 0 }
  0x49   : > { %vm441_vm2 = vmand %vm2752_vm7, %vm2764_vm4  ;;  %v445_v20 = vstv %s444_s28  ;;  %s2780_s5 = sld [smem:[#allocation3 + %s501_s4]]  ;;  %v430_v23 = vmax.f32 %v407_v12, %v1790_v17  ;;  %p466_p8 = scmp.ge.s32.totalorder %s2716_s21, 0  ;;  %vm2806_vm7 = vcmp.eq.s32.totalorder %v2169_v5, %v459_v25 }
  0x4a   : > { %vm2790_vm15 = vcmp.eq.s32.totalorder %v445_v20, 1  ;;  %v462_v26 = vstv %s2718_s24  ;;  %s2797_s9 = sld [smem:[#allocation3 + %s503_s7]]  ;;  %vm356_vm13 = vmand %vm350_vm12, %vm2625_vm9  ;;  %s524_s23 = sadd.s32 16, %s2151_s22  ;;  %vm2827_vm12 = vcmp.eq.s32.totalorder %v2179_v9, %v390_v47 }
  0x4b   : > { %v3482_v24 = vsel %vm2790_vm15, 4294967295, %v3481_v24  ;;  %vm447_vm5 = vmand %vm441_vm2, %vm2790_vm15  ;;  %vm2811_vm3 = vcmp.eq.s32.totalorder %v2174_v8, %v462_v26  ;;  %s526_s10 = sadd.s32 38, %s2151_s22  ;;  %v482_v31 = vstv %s2756_s16  ;;  %v1785_v32 = vsel %vm356_vm13, 1.0, %v2107_v22  ;;  %p489_p9 = scmp.ge.s32.totalorder %s2756_s16, 0 }
  0x4c   : > { %v1792_v30 = vsel %vm447_vm5, 1.0, %v2107_v22  ;;  %s467_s11 = scalar_select %p466_p8, 1, 0  ;;  %vm373_vm2 = vmand %vm2786_vm14, %vm2612_vm1  ;;  %vm2841_vm13 = vcmp.eq.s32.totalorder %v2169_v5, %v482_v31  ;;  %v362_v41 = vmax.f32 %v339_v29, %v1785_v32 }
  0x4d   : > { %s2832_s6 = sld [smem:[#allocation3 + %s524_s23]]  ;;  %v453_v34 = vmax.f32 %v430_v23, %v1792_v30  ;;  %s547_s13 = sadd.s32 17, %s2151_s22  ;;  %vm379_vm5 = vmand %vm373_vm2, %vm2660_vm11 }
  0x4e   : > { %v468_v35 = vstv %s467_s11  ;;  %v485_v37 = vstv %s2768_s29  ;;  %s2846_s30 = sld [smem:[#allocation3 + %s526_s10]]  ;;  %vm3495_vm11 = vmand %vm2806_vm7, %vm2811_vm3  ;;  %v1787_v44 = vsel %vm379_vm5, 1.0, %v2107_v22  ;;  %s549_s18 = sadd.s32 39, %s2151_s22 }
  0x4f   : > { %vm2851_vm9 = vcmp.eq.s32.totalorder %v468_v35, 1  ;;  %vm2856_vm1 = vcmp.eq.s32.totalorder %v2174_v8, %v485_v37  ;;  %s490_s14 = scalar_select %p489_p9, 1, 0  ;;  %v505_v40 = vstv %s2780_s5  ;;  %v385_v52 = vmax.f32 %v362_v41, %v1787_v44 }
  0x50   : > { %v3494_v39 = vsel %vm2856_vm1, 4294967295, %v3493_v39  ;;  %vm470_vm2 = vmand %vm3495_vm11, %vm2851_vm9  ;;  %vm2875_vm15 = vcmp.eq.s32.totalorder %v2169_v5, %v505_v40  ;;  %v508_v43 = vstv %s2797_s9  ;;  %p512_p10 = scmp.ge.s32.totalorder %s2780_s5, 0  ;;  %s2881_s15 = sld [smem:[#allocation3 + %s547_s13]] }
  0x51   : > { %v1794_v45 = vsel %vm470_vm2, 1.0, %v2107_v22  ;;  %vm487_vm7 = vmand %vm2841_vm13, %vm2856_vm1  ;;  %v491_v46 = vstv %s490_s14  ;;  %vm2890_vm11 = vcmp.eq.s32.totalorder %v2174_v8, %v508_v43  ;;  %s570_s19 = sadd.s32 18, %s2151_s22  ;;  %vm2907_vm2 = vcmp.eq.s32.totalorder %v2179_v9, %v413_v59  ;;  %s2915_s24 = sld [smem:[#allocation3 + %s549_s18]] }
  0x52   : > { %v476_v48 = vmax.f32 %v453_v34, %v1794_v45  ;;  %vm2896_vm5 = vcmp.eq.s32.totalorder %v491_v46, 1  ;;  %s513_s20 = scalar_select %p512_p10, 1, 0  ;;  %v3540_v43 = vmov 0 }
  0x53   : > { %v3501_v49 = vsel %vm2896_vm5, 4294967295, %v3500_v49  ;;  %vm493_vm14 = vmand %vm487_vm7, %vm2896_vm5  ;;  %v528_v51 = vstv %s2832_s6  ;;  %p535_p11 = scmp.ge.s32.totalorder %s2832_s6, 0  ;;  %s2926_s8 = sld [smem:[#allocation3 + %s570_s19]] }
  0x54   : > { %v1796_v53 = vsel %vm493_vm14, 1.0, %v2107_v22  ;;  %v514_v54 = vstv %s513_s20  ;;  %vm2921_vm13 = vcmp.eq.s32.totalorder %v2169_v5, %v528_v51  ;;  %v531_v57 = vstv %s2846_s30  ;;  %s572_s25 = sadd.s32 40, %s2151_s22  ;;  %vm3506_vm7 = vmand %vm2827_vm12, %vm2665_vm8  ;;  %s593_s29 = sadd.s32 19, %s2151_s22 }
  0x55   : > { %vm402_vm14 = vmand %vm3506_vm7, %vm2698_vm10  ;;  %v499_v58 = vmax.f32 %v476_v48, %v1796_v53  ;;  %vm2936_vm5 = vcmp.eq.s32.totalorder %v514_v54, 1  ;;  %vm2941_vm1 = vcmp.eq.s32.totalorder %v2174_v8, %v531_v57  ;;  %s536_s26 = scalar_select %p535_p11, 1, 0  ;;  %v1831_v54 = vld [vmem:[%s3360_s2 + $0x48] sm:$0x7f] }
  0x56   : > { %v3510_v60 = vsel %vm2941_vm1, 4294967295, %v3509_v60  ;;  %v1789_v61 = vsel %vm402_vm14, 1.0, %v2107_v22  ;;  %vm419_vm8 = vmand %vm2907_vm2, %vm2732_vm6  ;;  %v551_v56 = vstv %s2881_s15  ;;  %p558_p12 = scmp.ge.s32.totalorder %s2881_s15, 0  ;;  %s2959_s28 = sld [smem:[#allocation3 + %s572_s25]] }
  0x57   : > { %vm3511_vm10 = vmand %vm2875_vm15, %vm2890_vm11  ;;  %v537_v63 = vstv %s536_s26  ;;  %s595_s4 = sadd.s32 41, %s2151_s22  ;;  %vm2971_vm15 = vcmp.eq.s32.totalorder %v2179_v9, %v436_v11  ;;  %v408_v4 = vmax.f32 %v385_v52, %v1789_v61  ;;  %v554_v6 = vstv %s2915_s24  ;;  %s2996_s7 = sld [smem:[#allocation3 + %s593_s29]] }
  0x58   : > { %vm516_vm12 = vmand %vm3511_vm10, %vm2936_vm5  ;;  %vm2975_vm14 = vcmp.eq.s32.totalorder %v537_v63, 1  ;;  %s559_s12 = scalar_select %p558_p12, 1, 0  ;;  %v3548_v52 = vmov 0 }
  0x59   : > { %v1798_v62 = vsel %vm516_vm12, 1.0, %v2107_v22  ;;  %vm533_vm7 = vmand %vm2921_vm13, %vm2941_vm1  ;;  %vm2982_vm13 = vcmp.eq.s32.totalorder %v2169_v5, %v551_v56  ;;  %s2998_s9 = sld [smem:[#allocation3 + %s595_s4]]  ;;  %vm3003_vm1 = vcmp.eq.s32.totalorder %v2174_v8, %v554_v6  ;;  %v574_v13 = vstv %s2926_s8  ;;  %p581_p13 = scmp.ge.s32.totalorder %s2926_s8, 0 }
  0x5a   : > { %v522_v1 = vmax.f32 %v499_v58, %v1798_v62  ;;  %vm425_vm10 = vmand %vm419_vm8, %vm2745_vm0  ;;  %v560_v12 = vstv %s559_s12  ;;  %s616_s23 = sadd.s32 20, %s2151_s22  ;;  %vm3025_vm8 = vcmp.eq.s32.totalorder %v2169_v5, %v574_v13  ;;  %s618_s11 = sadd.s32 42, %s2151_s22 }
  0x5b   : > { %vm539_vm12 = vmand %vm533_vm7, %vm2975_vm14  ;;  %v1791_v10 = vsel %vm425_vm10, 1.0, %v2107_v22  ;;  %vm3018_vm2 = vcmp.eq.s32.totalorder %v560_v12, 1  ;;  %s3029_s10 = sld [smem:[#allocation3 + %s616_s23]]  ;;  %s639_s14 = sadd.s32 21, %s2151_s22 }
  0x5c   : > { %v1800_v11 = vsel %vm539_vm12, 1.0, %v2107_v22  ;;  %vm442_vm6 = vmand %vm2971_vm15, %vm2764_vm4  ;;  %v3521_v15 = vsel %vm3018_vm2, 4294967295, %v3520_v15  ;;  %v577_v17 = vstv %s2959_s28  ;;  %s582_s30 = scalar_select %p581_p13, 1, 0  ;;  %v431_v19 = vmax.f32 %v408_v4, %v1791_v10 }
  0x5d   : > { %v545_v14 = vmax.f32 %v522_v1, %v1800_v11  ;;  %vm556_vm0 = vmand %vm2982_vm13, %vm3003_vm1  ;;  %vm3038_vm13 = vcmp.eq.s32.totalorder %v2179_v9, %v459_v25  ;;  %vm3044_vm10 = vcmp.eq.s32.totalorder %v2174_v8, %v577_v17  ;;  %s3048_s13 = sld [smem:[#allocation3 + %s618_s11]]  ;;  %vm3528_vm12 = vnez %v3482_v24  ;;  %s641_s18 = sadd.s32 43, %s2151_s22 }
  0x5e   : > { %vm562_vm7 = vmand %vm556_vm0, %vm3018_vm2  ;;  %v583_v26 = vstv %s582_s30  ;;  %s3062_s21 = sld [smem:[#allocation3 + %s639_s14]]  ;;  %v597_v18 = vstv %s2996_s7  ;;  %p604_p0 = scmp.ge.s32.totalorder %s2996_s7, 0 }
  0x5f   : > { %v1802_v21 = vsel %vm562_vm7, 1.0, %v2107_v22  ;;  %vm448_vm0 = vmand %vm442_vm6, %vm3528_vm12  ;;  %vm3066_vm2 = vcmp.eq.s32.totalorder %v583_v26, 1  ;;  %v600_v29 = vstv %s2998_s9  ;;  %s3073_s19 = sld [smem:[#allocation3 + %s641_s18]]  ;;  %vm3084_vm6 = vcmp.eq.s32.totalorder %v2169_v5, %v597_v18  ;;  %s2109_s29 = smov 10  }
  0x60   : > { %v568_v25 = vmax.f32 %v545_v14, %v1802_v21  ;;  %vm579_vm7 = vmand %vm3025_vm8, %vm3044_vm10  ;;  %v1793_v24 = vsel %vm448_vm0, 1.0, %v2107_v22  ;;  %v3530_v27 = vsel %vm3066_vm2, 4294967295, %v3529_v27  ;;  %vm3089_vm8 = vcmp.eq.s32.totalorder %v2174_v8, %v600_v29  ;;  %s605_s22 = scalar_select %p604_p0, 1, 0 }
  0x61   : > { %vm465_vm4 = vmand %vm3038_vm13, %vm2811_vm3  ;;  %v454_v33 = vmax.f32 %v431_v19, %v1793_v24  ;;  %vm3096_vm12 = vcmp.eq.s32.totalorder %v2179_v9, %v482_v31  ;;  %v620_v35 = vstv %s3029_s10  ;;  %p627_p1 = scmp.ge.s32.totalorder %s3029_s10, 0  ;;  %s2110_s23 = smov 25  }
  0x62   : > { %vm585_vm15 = vmand %vm579_vm7, %vm3066_vm2  ;;  %v606_v31 = vstv %s605_s22  ;;  %vm3110_vm0 = vcmp.eq.s32.totalorder %v2169_v5, %v620_v35  ;;  %vm3539_vm7 = vnez %v3494_v39  ;;  %s2111_s14 = smov 35   ;;  %s2113_s18 = smov 60  }
  0x63   : > { %v1804_v34 = vsel %vm585_vm15, 1.0, %v2107_v22  ;;  %vm471_vm13 = vmand %vm465_vm4, %vm2851_vm9  ;;  %v623_v41 = vstv %s3048_s13  ;;  %vm3120_vm3 = vcmp.eq.s32.totalorder %v606_v31, 1  ;;  %s628_s16 = scalar_select %p627_p1, 1, 0  ;;  %vm3544_vm4 = vnez %v3501_v49 }
  0x64   : > { %v591_v36 = vmax.f32 %v568_v25, %v1804_v34  ;;  %v1795_v42 = vsel %vm471_vm13, 1.0, %v2107_v22  ;;  %vm488_vm15 = vmand %vm3096_vm12, %vm3539_vm7  ;;  %v3541_v43 = vsel %vm3120_vm3, 4294967295, %v3540_v43  ;;  %vm3125_vm9 = vcmp.eq.s32.totalorder %v2174_v8, %v623_v41  ;;  %p650_p2 = scmp.ge.s32.totalorder %s3062_s21, 0 }
  0x65   : > { %v3543_v38 = vsel %vm3125_vm9, 4294967295, %v3542_v38  ;;  %v643_v44 = vstv %s3062_s21  ;;  %v477_v45 = vmax.f32 %v454_v33, %v1795_v42  ;;  %vm494_vm13 = vmand %vm488_vm15, %vm3544_vm4  ;;  %v646_v46 = vstv %s3073_s19  ;;  %s2112_s21 = smov 50  }
  0x66   : > { %vm3545_vm12 = vmand %vm3084_vm6, %vm3089_vm8  ;;  %vm3140_vm2 = vcmp.eq.s32.totalorder %v2169_v5, %v643_v44  ;;  %v1797_v48 = vsel %vm494_vm13, 1.0, %v2107_v22  ;;  %v629_v50 = vstv %s628_s16  ;;  %vm3153_vm6 = vcmp.eq.s32.totalorder %v2174_v8, %v646_v46  ;;  %s651_s20 = scalar_select %p650_p2, 1, 0 }
  0x67   : > { %vm608_vm7 = vmand %vm3545_vm12, %vm3120_vm3  ;;  %v3549_v52 = vsel %vm3153_vm6, 4294967295, %v3548_v52  ;;  %vm507_vm4 = vcmp.eq.s32.totalorder %v2179_v9, %v505_v40  ;;  %vm3160_vm12 = vcmp.eq.s32.totalorder %v629_v50, 1  ;;  %v500_v55 = vmax.f32 %v477_v45, %v1797_v48  ;;  %s150_s16 = scalar_lea.vmem %s3361_s3, %s1860_s27 }
  0x68   : > { %v1806_v49 = vsel %vm608_vm7, 1.0, %v2107_v22  ;;  %vm625_vm15 = vmand %vm3110_vm0, %vm3125_vm9  ;;  %v652_v40 = vstv %s651_s20  ;;  %vm530_vm9 = vcmp.eq.s32.totalorder %v2179_v9, %v528_v51 }
  0x69   : > { %v614_v53 = vmax.f32 %v591_v36, %v1806_v49  ;;  %vm648_vm0 = vmand %vm3140_vm2, %vm3153_vm6  ;;  %vm3176_vm3 = vcmp.eq.s32.totalorder %v652_v40, 1 }
  0x6a   : > { %vm631_vm13 = vmand %vm625_vm15, %vm3160_vm12 }
  0x6b   : > { %v1808_v57 = vsel %vm631_vm13, 1.0, %v2107_v22  ;;  %vm511_vm7 = vmand %vm507_vm4, %vm2890_vm11  ;;  %vm553_vm11 = vcmp.eq.s32.totalorder %v2179_v9, %v551_v56  ;;  %vm670_vm4 = vcmask 80896   ;;  %vm3554_vm13 = vnez %v3510_v60 }
  0x6c   : > { %v637_v58 = vmax.f32 %v614_v53, %v1808_v57  ;;  %vm517_vm2 = vmand %vm511_vm7, %vm2936_vm5  ;;  %vm576_vm7 = vcmp.eq.s32.totalorder %v2179_v9, %v574_v13  ;;  %v1830_v53 = vld [vmem:[%s3360_s2 + $0x40] sm:$0xff] }
  0x6d   : > { %vm654_vm15 = vmand %vm648_vm0, %vm3176_vm3  ;;  %v1799_v62 = vsel %vm517_vm2, 1.0, %v2107_v22  ;;  %vm3555_vm2 = vnez %v3521_v15 }
  0x6e   : > { %v1810_v47 = vsel %vm654_vm15, 1.0, %v2107_v22  ;;  %v523_v51 = vmax.f32 %v500_v55, %v1799_v62  ;;  %vm534_vm6 = vmand %vm530_vm9, %vm3554_vm13  ;;  %vm599_vm9 = vcmp.eq.s32.totalorder %v2179_v9, %v597_v18  ;;  %v2008_v55 = vpack.c.bf16 %v1831_v54, %v1830_v53 }
  0x6f   : > { %v660_v63 = vmax.f32 %v637_v58, %v1810_v47  ;;  %vm540_vm5 = vmand %vm534_vm6, %vm2975_vm14  ;;  %vm3556_vm6 = vnez %v3530_v27 }
  0x70   : > { %v1801_v59 = vsel %vm540_vm5, 1.0, %v2107_v22  ;;  %vm557_vm0 = vmand %vm553_vm11, %vm3003_vm1  ;;  %vm622_vm1 = vcmp.eq.s32.totalorder %v2179_v9, %v620_v35  ;;  %vm3557_vm5 = vnez %v3541_v43 }
  0x71   : > { %v671_v56 = vsel %vm670_vm4, %v660_v63, 0.0  ;;  %v546_v0 = vmax.f32 %v523_v51, %v1801_v59  ;;  %vm563_vm15 = vmand %vm557_vm0, %vm3555_vm2  ;;  %vm645_vm2 = vcmp.eq.s32.totalorder %v2179_v9, %v643_v44 }
  0x72   : > { %683 = vadd.xlane.f32.xlu0 %v671_v56  ;;  %v1803_v60 = vsel %vm563_vm15, 1.0, %v2107_v22  ;;  %vm580_vm14 = vmand %vm576_vm7, %vm3044_vm10  ;;  %vm3558_vm10 = vnez %v3543_v38 }
  0x73   : > { %v569_v1 = vmax.f32 %v546_v0, %v1803_v60  ;;  %vm586_vm13 = vmand %vm580_vm14, %vm3556_vm6  ;;  %vm3559_vm14 = vnez %v3549_v52  ;;  %vm672_vm6 = vcmask 74752  }
  0x74   : > { %v1805_v2 = vsel %vm586_vm13, 1.0, %v2107_v22  ;;  %vm603_vm11 = vmand %vm599_vm9, %vm3089_vm8  ;;  %vm2108_vm13 = vmmov 1  }
  0x75   : > { %v592_v3 = vmax.f32 %v569_v1, %v1805_v2  ;;  %vm609_vm0 = vmand %vm603_vm11, %vm3557_vm5  ;;  %vm663_vm11 = vcmp.eq.s32.totalorder %v2179_v9, %v2174_v8  ;;  %v1821_v9 = vld [vmem:[%s3360_s2 + $0x28] sm:$0x3] }
  0x76   : > { %v1807_v4 = vsel %vm609_vm0, 1.0, %v2107_v22  ;;  %vm626_vm7 = vmand %vm622_vm1, %vm3558_vm10  ;;  %v1813_v37 = vsel %vm663_vm11, 1.0, %v2107_v22 }
  0x77   : > { %v615_v6 = vmax.f32 %v592_v3, %v1807_v4  ;;  %vm632_vm15 = vmand %vm626_vm7, %vm3160_vm12  ;;  %vm792_vm12 = vcmask 1041408  }
  0x78   : > { %v1809_v10 = vsel %vm632_vm15, 1.0, %v2107_v22  ;;  %vm649_vm8 = vmand %vm645_vm2, %vm3559_vm14  ;;  %vm1064_vm2 = vcmask 1046528   ;;  %vm1057_vm15 = vcmask 121856  }
  0x79   : > { %v638_v11 = vmax.f32 %v615_v6, %v1809_v10  ;;  %vm655_vm9 = vmand %vm649_vm8, %vm3176_vm3  ;;  %vm662_vm3 = vcmp.eq.s32.totalorder %v2169_v5, %v2174_v8  ;;  %v1820_v8 = vld [vmem:[%s3360_s2 + $0x20] sm:$0xff]  ;;  %v1839_v10 = vld [vmem:[%s3360_s2 + $0x68] sm:$0x3] }
  0x7a   : > { %v1811_v7 = vsel %vm655_vm9, 1.0, %v2107_v22  ;;  %vm3229_vm1 = vmpackc.low %vm792_vm12, %vm2108_vm13  ;;  %v1812_v30 = vsel %vm662_vm3, 1.0, %v2107_v22  ;;  %v1996_v22 = vpack.c.bf16 %v1821_v9, %v1820_v8  ;;  %v1838_v6 = vld [vmem:[%s3360_s2 + $0x60] sm:$0xff]  ;;  %vm1686_vm9 = vcmask 203776  }
  0x7b   : > { %v661_v12 = vmax.f32 %v638_v11, %v1811_v7  ;;  %v668_v32 = vadd.f32 %v1812_v30, %v660_v63  ;;  %vm3286_vm10 = vmpackc.low %vm1064_vm2, %vm2108_vm13  ;;  %v2020_v11 = vpack.c.bf16 %v1839_v10, %v1838_v6  ;;  %v1847_v30 = vld [vmem:[%s3360_s2 + $0x88] sm:$0x7f]  ;;  %vm1692_vm12 = vcmask 408576  }
  0x7c   : > { %1998 = vmatprep.subr.msk.bf16.mxu1 %vm3229_vm1, %v1996_v22  ;;  %vm2045_vm8 = vmpackc.low %vm670_vm4, %vm670_vm4  ;;  %vm1695_vm13 = vcmask 490496  }
  0x7d   : > { %v673_v13 = vsel %vm672_vm6, %v661_v12, 0.0  ;;  %v669_v5 = vadd.f32 %v1813_v37, %v661_v12  ;;  %2001 = vmatpush3.bf16.msk.msra.mxu1 %vm3229_vm1, %v1996_v22  ;;  %vm1689_vm6 = vcmask 285696  }
  0x7e   : > { %685 = vadd.xlane.f32.xlu0 %v673_v13  ;;  %v674_v14 = vadd.f32 %v673_v13, %v671_v56  ;;  %2010 = vmatprep.subr.msk.bf16.mxu1 %vm3286_vm10, %v2008_v55 }
  0x80   : > { %v675_v15 = vrot.slane %v674_v14, 4 }
  0x82   : > { %v676_v16 = vadd.f32 %v675_v15, %v674_v14 }
  0x84   : > { %v677_v17 = vrot.slane %v676_v16, 2 }
  0x86   : > { %v678_v19 = vadd.f32 %v677_v17, %v676_v16 }
  0x88   : > { %v679_v26 = vrot.slane %v678_v19, 1 }
  0x8a   : > { %v680_v24 = vadd.f32 %v679_v26, %v678_v19 }
  0x8c   : > { %v681_v27 = vadd.f32 1.0, %v680_v24 }
  0x8e   : > { %2066 = vrsqrt.f32 %v681_v27 }
  0x98   : > { %v2067_v33 = vpop.eup %2066 }
  0xf4   : > { %v1915_v20 = vpop.f32.mrb[0].mxu0 }
  0xf5   : > { %v777_v21 = vpop.f32.mrb[1].mxu0 }
  0xf6   : > { %v1990_v25 = vpack.c.bf16 %v1915_v20, %v777_v21 }
  0xf8   : > { %1992 = vmatprep.subr.msk.bf16.mxu0 %vm3229_vm1, %v1990_v25 }
  0xf9   : > { %1995 = vmatpush3.bf16.msk.msra.mxu0 %vm3229_vm1, %v1990_v25 }
  0xff   : > { %v684_v18 = vpop.xlane.xlu0 %683 }
 0x100   : > { %v687_v29 = vadd.f32 1.0, %v684_v18 }
 0x102   : > { %2068 = vrsqrt.f32 %v687_v29  ;;  %v1846_v29 = vld [vmem:[%s3360_s2 + $0x80] sm:$0xff] }
 0x10b   : > { %v686_v28 = vpop.xlane.xlu0 %685 }
 0x10c   : > { %v2069_v34 = vpop.eup %2068  ;;  %v688_v35 = vadd.f32 1.0, %v686_v28 }
 0x10d   : > { %v691_v36 = vmul.f32 %v2069_v34, %v668_v32  ;;  %v2032_v32 = vpack.c.bf16 %v1847_v30, %v1846_v29 }
 0x10e   : > { %2070 = vrsqrt.f32 %v688_v35 }
 0x10f   : > { %v3242_v31 = vmul.f32 %v2067_v33, %v691_v36 }
 0x111   : > { %1920 = vmatprep.mubr.msk.f32.mxu0 %vm670_vm4, %v3242_v31 }
 0x118   : > { %v2071_v41 = vpop.eup %2070 }
 0x119   : > { %v692_v42 = vmul.f32 %v2071_v41, %v669_v5 }
 0x11b   : > { %v3247_v43 = vmul.f32 %v2067_v33, %v692_v42 }
 0x11d   : > { %1921 = vmatmul.mubr.msk.f32.vlgmr.msra.gmra.mrb[2].mxu0 %vm670_vm4, %v3247_v43 }
 0x11e   : > { %1934 = vmatprep.mubr.msk.f32.mxu0 %vm670_vm4, %v3242_v31 }
 0x1f0   : > { %v1922_v38 = vpop.f32.mrb[2].mxu0 }
 0x1f1   : > { %v874_v44 = vmul.f32 0.01, %v1922_v38  ;;  %v862_v45 = vpop.f32.mrb[3].mxu0  ;;  %vm872_vm5 = vcmp.ge.f32.partialorder %v1922_v38, 0.0 }
 0x1f2   : > { %v873_v39 = vmul.f32 0.01, %v862_v45  ;;  %vm871_vm0 = vcmp.ge.f32.partialorder %v862_v45, 0.0 }
 0x1f3   : > { %v3267_v48 = vsel %vm872_vm5, %v1922_v38, %v874_v44 }
 0x1f4   : > { %v3263_v46 = vsel %vm871_vm0, %v862_v45, %v873_v39 }
 0x1f5   : > { %1927 = vmatprep.mubr.msk.f32.mxu1 %vm670_vm4, %v3263_v46 }
 0x1f6   : > { %1928 = vmatmul.mubr.msk.f32.vlgmr.msra.gmra.mrb[0].mxu1 %vm670_vm4, %v3267_v48 }
 0x1f7   : > { %2013 = vmatpush3.bf16.msk.msra.mxu1 %vm3286_vm10, %v2008_v55 }
 0x1f8   : > { %2022 = vmatprep.subr.msk.bf16.mxu1 %vm3229_vm1, %v2020_v11 }
 0x2c9   : > { %v1929_v49 = vpop.f32.mrb[0].mxu1 }
 0x2ca   : > { %v955_v50 = vpop.f32.mrb[1].mxu1 }
 0x2cb   : > { %v2002_v52 = vpack.c.bf16 %v1929_v49, %v955_v50 }
 0x2cd   : > { %2004 = vmatprep.subr.msk.bf16.mxu0 %vm3229_vm1, %v2002_v52 }
 0x2ce   : > { %2007 = vmatpush3.bf16.msk.msra.mxu0 %vm3229_vm1, %v2002_v52 }
 0x2d1   : > { %1935 = vmatmul.mubr.msk.f32.vlgmr.msra.gmra.mrb[4].mxu0 %vm670_vm4, %v3247_v43 }
 0x2d2   : > { %1948 = vmatprep.mubr.msk.f32.mxu0 %vm670_vm4, %v3242_v31 }
 0x3a4   : > { %v1936_v40 = vpop.f32.mrb[4].mxu0 }
 0x3a5   : > { %v1045_v58 = vmin.f32 %v1936_v40, 0.0  ;;  %v1033_v61 = vpop.f32.mrb[5].mxu0  ;;  %vm1043_vm7 = vcmp.gt.f32.partialorder %v1936_v40, 0.0 }
 0x3a6   : > { %v1044_v62 = vmin.f32 %v1033_v61, 0.0  ;;  %vm1042_vm14 = vcmp.gt.f32.partialorder %v1033_v61, 0.0 }
 0x3a7   : > { %v1048_v47 = vmul.f32 1.442695, %v1045_v58 }
 0x3a8   : > { %v1046_v51 = vmul.f32 1.442695, %v1044_v62 }
 0x3a9   : > { %2072 = vpow2.f32 %v1048_v47 }
 0x3aa   : > { %2074 = vpow2.f32 %v1046_v51 }
 0x3b3   : > { %v2073_v63 = vpop.eup %2072 }
 0x3b4   : > { %v2075_v59 = vpop.eup %2074  ;;  %v1829_v56 = vadd.f32 -1.0, %v2073_v63 }
 0x3b5   : > { %v1828_v0 = vadd.f32 -1.0, %v2075_v59 }
 0x3b6   : > { %v1053_v60 = vsel %vm1043_vm7, %v1936_v40, %v1829_v56 }
 0x3b7   : > { %1654 = vrot.lane.b32.xlu1 %v1053_v60, %s2109_s29  ;;  %v1052_v1 = vsel %vm1042_vm14, %v1033_v61, %v1828_v0 }
 0x3b8   : > { %1941 = vmatprep.mubr.msk.f32.mxu1 %vm1057_vm15, %v1052_v1 }
 0x3b9   : > { %1942 = vmatmul.mubr.msk.f32.vlgmr.msra.gmra.mrb[2].mxu1 %vm1057_vm15, %v1053_v60 }
 0x3ba   : > { %2025 = vmatpush3.bf16.msk.msra.mxu1 %vm3229_vm1, %v2020_v11 }
 0x3bb   : > { %1652 = vrot.lane.b32.xlu1 %v1052_v1, %s2109_s29  ;;  %2034 = vmatprep.subr.msk.bf16.mxu1 %vm3286_vm10, %v2032_v32 }
 0x429   : > { %v1655_v50 = vpop.permute.xlu1 %1654 }
 0x42a   : > { %v1685_v58 = vsel %vm670_vm4, %v3267_v48, %v1655_v50 }
 0x42d   : > { %v1653_v52 = vpop.permute.xlu1 %1652 }
 0x42e   : > { %v1684_v62 = vsel %vm670_vm4, %v3263_v46, %v1653_v52 }
 0x48c   : > { %v1943_v2 = vpop.f32.mrb[2].mxu1 }
 0x48d   : > { %v1134_v3 = vpop.f32.mrb[3].mxu1 }
 0x48e   : > { %v2014_v4 = vpack.c.bf16 %v1943_v2, %v1134_v3 }
 0x490   : > { %2016 = vmatprep.subr.msk.bf16.mxu0 %vm3229_vm1, %v2014_v4 }
 0x491   : > { %2019 = vmatpush3.bf16.msk.msra.mxu0 %vm3229_vm1, %v2014_v4 }
 0x494   : > { %1949 = vmatmul.mubr.msk.f32.vlgmr.msra.gmra.mrb[6].mxu0 %vm670_vm4, %v3247_v43 }
 0x495   : > { %1962 = vmatprep.mubr.msk.f32.mxu0 %vm670_vm4, %v3242_v31 }
 0x567   : > { %v1950_v7 = vpop.f32.mrb[6].mxu0 }
 0x568   : > { %v1222_v12 = vmul.f32 0.5, %v1950_v7  ;;  %v1212_v13 = vpop.f32.mrb[7].mxu0 }
 0x569   : > { %v1221_v14 = vmul.f32 0.5, %v1212_v13 }
 0x56a   : > { %2076 = vtanh.f32 %v1222_v12 }
 0x56b   : > { %2078 = vtanh.f32 %v1221_v14 }
 0x574   : > { %v2077_v15 = vpop.eup %2076 }
 0x575   : > { %v2079_v16 = vpop.eup %2078  ;;  %v1226_v17 = vmul.f32 0.5, %v2077_v15 }
 0x576   : > { %v1225_v19 = vmul.f32 0.5, %v2079_v16 }
 0x577   : > { %v1228_v20 = vadd.f32 0.5, %v1226_v17 }
 0x578   : > { %v1227_v21 = vadd.f32 0.5, %v1225_v19 }
 0x579   : > { %v1230_v25 = vmul.f32 %v1950_v7, %v1228_v20 }
 0x57a   : > { %v1229_v26 = vmul.f32 %v1227_v21, %v1212_v13 }
 0x57b   : > { %1660 = vrot.lane.b32.xlu1 %v1230_v25, %s2110_s23 }
 0x57c   : > { %1658 = vrot.lane.b32.xlu0 %v1229_v26, %s2110_s23  ;;  %1955 = vmatprep.mubr.msk.f32.mxu1 %vm670_vm4, %v1229_v26 }
 0x57d   : > { %1956 = vmatmul.mubr.msk.f32.vlgmr.msra.gmra.mrb[4].mxu1 %vm670_vm4, %v1230_v25 }
 0x57e   : > { %2037 = vmatpush3.bf16.msk.msra.mxu1 %vm3286_vm10, %v2032_v32 }
 0x5ed   : > { %v1661_v53 = vpop.permute.xlu1 %1660 }
 0x5ee   : > { %v1659_v40 = vpop.permute.xlu0 %1658  ;;  %v1688_v47 = vsel %vm1686_vm9, %v1685_v58, %v1661_v53 }
 0x5ef   : > { %v1687_v51 = vsel %vm1686_vm9, %v1684_v62, %v1659_v40 }
 0x650   : > { %v1957_v24 = vpop.f32.mrb[4].mxu1 }
 0x651   : > { %v1309_v27 = vpop.f32.mrb[5].mxu1 }
 0x652   : > { %v2026_v18 = vpack.c.bf16 %v1957_v24, %v1309_v27 }
 0x654   : > { %2028 = vmatprep.subr.msk.bf16.mxu0 %vm3229_vm1, %v2026_v18 }
 0x655   : > { %2031 = vmatpush3.bf16.msk.msra.mxu0 %vm3229_vm1, %v2026_v18 }
 0x658   : > { %1963 = vmatmul.mubr.msk.f32.vlgmr.msra.gmra.mrb[8].mxu0 %vm670_vm4, %v3247_v43 }
 0x659   : > { %1976 = vmatprep.mubr.msk.f32.mxu0 %vm670_vm4, %v3242_v31 }
 0x72b   : > { %v1964_v33 = vpop.f32.mrb[8].mxu0 }
 0x72c   : > { %v1397_v28 = vmax.f32 %v1964_v33, 0.0  ;;  %v1387_v34 = vpop.f32.mrb[9].mxu0 }
 0x72d   : > { %v1396_v35 = vmax.f32 %v1387_v34, 0.0 }
 0x72e   : > { %1666 = vrot.lane.b32.xlu1 %v1397_v28, %s2111_s14 }
 0x72f   : > { %1969 = vmatprep.mubr.msk.f32.mxu1 %vm1057_vm15, %v1396_v35 }
 0x730   : > { %1970 = vmatmul.mubr.msk.f32.vlgmr.msra.gmra.mrb[6].mxu1 %vm1057_vm15, %v1397_v28 }
 0x732   : > { %1664 = vrot.lane.b32.xlu1 %v1396_v35, %s2111_s14 }
 0x7a0   : > { %v1667_v54 = vpop.permute.xlu1 %1666 }
 0x7a1   : > { %v1691_v63 = vsel %vm1689_vm6, %v1688_v47, %v1667_v54 }
 0x7a4   : > { %v1665_v55 = vpop.permute.xlu1 %1664 }
 0x7a5   : > { %v1690_v59 = vsel %vm1689_vm6, %v1687_v51, %v1665_v55 }
 0x803   : > { %v1971_v36 = vpop.f32.mrb[6].mxu1 }
 0x804   : > { %v1476_v31 = vpop.f32.mrb[7].mxu1 }
 0x805   : > { %v2038_v37 = vpack.c.bf16 %v1971_v36, %v1476_v31 }
 0x807   : > { %2040 = vmatprep.subr.msk.bf16.mxu0 %vm3229_vm1, %v2038_v37 }
 0x808   : > { %2043 = vmatpush3.bf16.msk.msra.mxu0 %vm3229_vm1, %v2038_v37  ;;  %vm1698_vm1 = vcmask 572416  }
 0x80b   : > { %1977 = vmatmul.mubr.msk.f32.vlgmr.msra.gmra.mrb[10].mxu0 %vm670_vm4, %v3247_v43 }
 0x8de   : > { %v1978_v5 = vpop.f32.mrb[10].mxu0 }
 0x8df   : > { %1672 = vrot.lane.b32.xlu1 %v1978_v5, %s2112_s21  ;;  %v1554_v41 = vpop.f32.mrb[11].mxu0 }
 0x8e0   : > { %v2044_v42 = vpack.c.bf16 %v1978_v5, %v1554_v41  ;;  %1983 = vmatprep.mubr.msk.f32.mxu1 %vm670_vm4, %v1554_v41 }
 0x8e2   : > { %2046 = vmatprep.subr.msk.bf16.mxu1 %vm2045_vm8, %v2044_v42 }
 0x8e3   : > { %1670 = vrot.lane.b32.xlu1 %v1554_v41, %s2112_s21  ;;  %2049 = vmatpush3.bf16.xpose.msk.msra.mxu1 %vm2045_vm8, %v2044_v42 }
 0x8ea   : > { %1984 = vmatmul.mubr.msk.f32.vlgmr.msra.gmra.mrb[8].mxu1 %vm670_vm4, %v1978_v5 }
 0x951   : > { %v1673_v57 = vpop.permute.xlu1 %1672 }
 0x952   : > { %v1694_v56 = vsel %vm1692_vm12, %v1691_v63, %v1673_v57 }
 0x955   : > { %v1671_v61 = vpop.permute.xlu1 %1670 }
 0x956   : > { %v1693_v60 = vsel %vm1692_vm12, %v1690_v59, %v1671_v61 }
 0x9bd   : > { %v1985_v23 = vpop.f32.mrb[8].mxu1 }
 0x9be   : > { %v1645_v8 = vmul.f32 0.5, %v1985_v23  ;;  %v1635_v9 = vpop.f32.mrb[9].mxu1 }
 0x9bf   : > { %v1644_v22 = vmul.f32 0.5, %v1635_v9 }
 0x9c0   : > { %2080 = vtanh.f32 %v1645_v8 }
 0x9c1   : > { %2082 = vtanh.f32 %v1644_v22 }
 0x9ca   : > { %v2081_v43 = vpop.eup %2080 }
 0x9cb   : > { %v2083_v38 = vpop.eup %2082  ;;  %v1649_v44 = vmul.f32 0.5, %v2081_v43 }
 0x9cc   : > { %v1648_v45 = vmul.f32 0.5, %v2083_v38 }
 0x9cd   : > { %v1651_v39 = vadd.f32 0.5, %v1649_v44 }
 0x9ce   : > { %v1650_v49 = vadd.f32 0.5, %v1648_v45 }
 0x9cf   : > { %1680 = vrot.lane.b32.xlu0 %v1651_v39, %s2113_s18 }
 0x9d0   : > { %1678 = vrot.lane.b32.xlu1 %v1650_v49, %s2113_s18 }
 0xa41   : > { %v1681_v0 = vpop.permute.xlu0 %1680 }
 0xa42   : > { %v1697_v48 = vsel %vm1695_vm13, %v1694_v56, %v1681_v0  ;;  %v1679_v1 = vpop.permute.xlu1 %1678 }
 0xa43   : > { %v1700_v2 = vsel %vm1698_vm1, %v1697_v48, 0.0  ;;  %v1696_v3 = vsel %vm1695_vm13, %v1693_v60, %v1679_v1 }
 0xa44   : > { %1702 = vst [vmem:[%s150_s16 + $0x8] sm:$0x3] %v1700_v2  ;;  %v1699_v46 = vsel %vm1698_vm1, %v1696_v3, 0.0 }
 0xa45   : > { %1701 = vst [vmem:[%s150_s16] sm:$0xff] %v1699_v46 }
 0xa46 PF: > { %s19_s17 = sadd.s32 1, %s2104_s17  }
 0xa47   : > { %p16_p3 = scmp.ge.s32.totalorder %s19_s17, 10  }
 0xa49   :  { %18 = sbr.rel (!%p16_p3) target bundleno = 16 (0x10), region = 62 }

</bundles_post_ra>
